<compile_context>
chip_gen: v6e
topology: v6e:2x2x1
jax: 0.10.0
libtpu: 0.0.40
codegen_flags: <defaults>
</compile_context>

<pallas_src>
import numpy as np
import jax
import jax.numpy as jnp
from jax.experimental import pallas as pl
from jax.experimental.pallas import tpu as pltpu


def _full_spec(shape):
    n = len(shape)
    return pl.BlockSpec(shape, lambda i, _n=n: (0,) * _n)


def _seq_model_kernel(x_ref, we_ref, be_ref,
                      wih0_ref, whh0_ref, b0_ref,
                      wih1_ref, whh1_ref, b1_ref,
                      wt_ref, bt_ref,
                      scores_ref, space_ref):
    T = x_ref.shape[0]
    Hd = whh0_ref.shape[0]

    # "transformer" embedding: flattened NCHW image -> embedding vector (one batched MXU matmul).
    embeds = jnp.dot(x_ref[...], we_ref[...],
                     preferred_element_type=jnp.float32) + be_ref[...]          # (T, E)

    def recur(pre_gates, whh_ref):
        """One LSTM layer. pre_gates = x @ W_ih + b, precomputed for all T (gate order i|f|o|g).
        The serial chain per step is a single (1,H)x(H,4H) matmul + activations."""
        h = jnp.zeros((1, Hd), jnp.float32)      # init_hidden(): zeros, batch=1
        c = jnp.zeros((1, Hd), jnp.float32)
        hs = []
        for t in range(T):                        # fully unrolled: T is static & small
            gates = pre_gates[t:t + 1, :] + jnp.dot(
                h, whh_ref[...], preferred_element_type=jnp.float32)            # (1, 4H)
            sig = jax.nn.sigmoid(gates[:, :3 * Hd])          # one EUP launch: i|f|o slab
            i = sig[:, 0 * Hd:1 * Hd]
            f = sig[:, 1 * Hd:2 * Hd]
            o = sig[:, 2 * Hd:3 * Hd]
            g = jnp.tanh(gates[:, 3 * Hd:4 * Hd])            # one EUP launch: g slab
            c = f * c + i * g
            h = o * jnp.tanh(c)
            hs.append(h)
        return jnp.concatenate(hs, axis=0)                   # (T, H), stays in vregs

    # Layer 0: hoisted input-path matmul (batched over T), then the serial recurrence.
    pre0 = jnp.dot(embeds, wih0_ref[...],
                   preferred_element_type=jnp.float32) + b0_ref[...]            # (T, 4H)
    h0_seq = recur(pre0, whh0_ref)

    # Layer 1: same two-pass structure, fed by layer 0's full output sequence.
    pre1 = jnp.dot(h0_seq, wih1_ref[...],
                   preferred_element_type=jnp.float32) + b1_ref[...]            # (T, 4H)
    h1_seq = recur(pre1, whh1_ref)

    tag_space = jnp.dot(h1_seq, wt_ref[...],
                        preferred_element_type=jnp.float32) + bt_ref[...]       # (T, O)
    space_ref[...] = tag_space
    # F.log_softmax(tag_space, dim=1): dim 1 is the size-1 batch axis -> exactly zero.
    scores_ref[...] = jnp.zeros_like(tag_space)


def _reorder_gates(w, axis):
    """Permute PyTorch LSTM gate blocks (i|f|g|o) -> kernel order (i|f|o|g)."""
    i, f, g, o = jnp.split(w, 4, axis=axis)
    return jnp.concatenate([i, f, o, g], axis=axis)


def sequence_model_forward(x, params):
    """x: (seq, C, H, W) float32 NCHW.  Returns (tag_scores, tag_space), each (seq, 1, out_dim)."""
    T = x.shape[0]
    x_flat = x.reshape(T, -1).astype(jnp.float32)
    (we, be, wih0, whh0, b0, wih1, whh1, b1, wt, bt) = params
    O = wt.shape[1]

    # Host-side gate-column permutation so the kernel's sigmoid slab is contiguous.
    wih0 = _reorder_gates(wih0, axis=1)
    whh0 = _reorder_gates(whh0, axis=1)
    b0 = _reorder_gates(b0, axis=1)
    wih1 = _reorder_gates(wih1, axis=1)
    whh1 = _reorder_gates(whh1, axis=1)
    b1 = _reorder_gates(b1, axis=1)

    operands = (x_flat, we, be, wih0, whh0, b0, wih1, whh1, b1, wt, bt)
    grid_spec = pltpu.PrefetchScalarGridSpec(
        num_scalar_prefetch=0,
        grid=(1,),
        in_specs=[_full_spec(a.shape) for a in operands],
        out_specs=(_full_spec((T, O)), _full_spec((T, O))),
        scratch_shapes=[],
    )
    scores, space = pl.pallas_call(
        _seq_model_kernel,
        out_shape=(jax.ShapeDtypeStruct((T, O), jnp.float32),
                   jax.ShapeDtypeStruct((T, O), jnp.float32)),
        grid_spec=grid_spec,
        compiler_params=pltpu.CompilerParams(dimension_semantics=("arbitrary",)),
    )(*operands)
    # PyTorch output layout: (seq, batch=1, out_dim)
    return scores.reshape(T, 1, O), space.reshape(T, 1, O)


def init_params(key, in_features, embedding_d, hidden_d, out_dim):
    """Deterministic synthetic parameters (PyTorch-style uniform init, gate order i|f|g|o)."""
    ks = jax.random.split(key, 10)

    def u(k, shape, scale):
        return jax.random.uniform(k, shape, jnp.float32, -scale, scale)

    se = 1.0 / np.sqrt(in_features)
    sh = 1.0 / np.sqrt(hidden_d)
    we = u(ks[0], (in_features, embedding_d), se)     # "transformer" (linear embed)
    be = u(ks[1], (1, embedding_d), se)
    wih0 = u(ks[2], (embedding_d, 4 * hidden_d), sh)  # LSTM layer 0 (i|f|g|o)
    whh0 = u(ks[3], (hidden_d, 4 * hidden_d), sh)
    b0 = u(ks[4], (1, 4 * hidden_d), sh)              # b_ih + b_hh folded together
    wih1 = u(ks[5], (hidden_d, 4 * hidden_d), sh)     # LSTM layer 1
    whh1 = u(ks[6], (hidden_d, 4 * hidden_d), sh)
    b1 = u(ks[7], (1, 4 * hidden_d), sh)
    wt = u(ks[8], (hidden_d, out_dim), sh)            # hidden2tag
    bt = u(ks[9], (1, out_dim), sh)
    return (we, be, wih0, whh0, b0, wih1, whh1, b1, wt, bt)


def reference_forward(x, params):
    """Pure-JAX reference mirroring the PyTorch forward (for verification)."""
    (we, be, wih0, whh0, b0, wih1, whh1, b1, wt, bt) = params
    T = x.shape[0]
    Hd = whh0.shape[0]
    embeds = x.reshape(T, -1) @ we + be

    def cell(x_row, h, c, wih, whh, b):
        gates = x_row @ wih + h @ whh + b
        i = jax.nn.sigmoid(gates[:, :Hd])
        f = jax.nn.sigmoid(gates[:, Hd:2 * Hd])
        g = jnp.tanh(gates[:, 2 * Hd:3 * Hd])
        o = jax.nn.sigmoid(gates[:, 3 * Hd:])
        c = f * c + i * g
        h = o * jnp.tanh(c)
        return h, c

    h0 = c0 = h1 = c1 = jnp.zeros((1, Hd), jnp.float32)
    outs = []
    for t in range(T):
        h0, c0 = cell(embeds[t:t + 1], h0, c0, wih0, whh0, b0)
        h1, c1 = cell(h0, h1, c1, wih1, whh1, b1)
        outs.append(h1)
    lstm_out = jnp.concatenate(outs, axis=0)
    tag_space = (lstm_out @ wt + bt).reshape(T, 1, -1)
    tag_scores = jax.nn.log_softmax(tag_space, axis=1)   # dim=1 (singleton) -> zeros
    return tag_scores, tag_space


if __name__ == "__main__":
    # Small shapes implied by the module: seq of NCHW images, LSTM batch = 1.
    T, C, Himg, Wimg = 8, 4, 16, 16
    embedding_d, hidden_d, out_dim = 32, 32, 10

    key = jax.random.PRNGKey(0)
    kx, kp = jax.random.split(key)
    x = jax.random.normal(kx, (T, C, Himg, Wimg), jnp.float32)
    params = init_params(kp, C * Himg * Wimg, embedding_d, hidden_d, out_dim)

    tag_scores, tag_space = sequence_model_forward(x, params)
    jax.block_until_ready((tag_scores, tag_space))

    ref_scores, ref_space = reference_forward(x, params)
    assert tag_scores.shape == (T, 1, out_dim)
    np.testing.assert_allclose(np.asarray(tag_space), np.asarray(ref_space),
                               rtol=1e-5, atol=1e-5)
    np.testing.assert_allclose(np.asarray(tag_scores), np.asarray(ref_scores),
                               atol=1e-6)
    print("KERNEL_OK")
</pallas_src>

<mosaic_0001>
module attributes {stable_mosaic.version = 11 : i64} {
  func.func @_seq_model_kernel(%arg0: i32, %arg1: memref<8x1024xf32, #tpu.memory_space<vmem>>, %arg2: memref<1024x32xf32, #tpu.memory_space<vmem>>, %arg3: memref<1x32xf32, #tpu.memory_space<vmem>>, %arg4: memref<32x128xf32, #tpu.memory_space<vmem>>, %arg5: memref<32x128xf32, #tpu.memory_space<vmem>>, %arg6: memref<1x128xf32, #tpu.memory_space<vmem>>, %arg7: memref<32x128xf32, #tpu.memory_space<vmem>>, %arg8: memref<32x128xf32, #tpu.memory_space<vmem>>, %arg9: memref<1x128xf32, #tpu.memory_space<vmem>>, %arg10: memref<32x10xf32, #tpu.memory_space<vmem>>, %arg11: memref<1x10xf32, #tpu.memory_space<vmem>>, %arg12: memref<8x10xf32, #tpu.memory_space<vmem>>, %arg13: memref<8x10xf32, #tpu.memory_space<vmem>>) attributes {dimension_semantics = [#tpu.dimension_semantics<arbitrary>], iteration_bounds = array<i64: 1>, scalar_prefetch = 0 : i64, scratch_operands = 0 : i64, tpu.core_type = #tpu.core_type<tc>, window_params = [{pipeline_mode = #tpu.pipeline_mode<synchronous>, transform_indices = @transform_0, window_bounds = array<i64: 8, 1024>}, {pipeline_mode = #tpu.pipeline_mode<synchronous>, transform_indices = @transform_1, window_bounds = array<i64: 1024, 32>}, {pipeline_mode = #tpu.pipeline_mode<synchronous>, transform_indices = @transform_2, window_bounds = array<i64: 1, 32>}, {pipeline_mode = #tpu.pipeline_mode<synchronous>, transform_indices = @transform_3, window_bounds = array<i64: 32, 128>}, {pipeline_mode = #tpu.pipeline_mode<synchronous>, transform_indices = @transform_4, window_bounds = array<i64: 32, 128>}, {pipeline_mode = #tpu.pipeline_mode<synchronous>, transform_indices = @transform_5, window_bounds = array<i64: 1, 128>}, {pipeline_mode = #tpu.pipeline_mode<synchronous>, transform_indices = @transform_6, window_bounds = array<i64: 32, 128>}, {pipeline_mode = #tpu.pipeline_mode<synchronous>, transform_indices = @transform_7, window_bounds = array<i64: 32, 128>}, {pipeline_mode = #tpu.pipeline_mode<synchronous>, transform_indices = @transform_8, window_bounds = array<i64: 1, 128>}, {pipeline_mode = #tpu.pipeline_mode<synchronous>, transform_indices = @transform_9, window_bounds = array<i64: 32, 10>}, {pipeline_mode = #tpu.pipeline_mode<synchronous>, transform_indices = @transform_10, window_bounds = array<i64: 1, 10>}, {pipeline_mode = #tpu.pipeline_mode<synchronous>, transform_indices = @transform_11, window_bounds = array<i64: 8, 10>}, {pipeline_mode = #tpu.pipeline_mode<synchronous>, transform_indices = @transform_12, window_bounds = array<i64: 8, 10>}]} {
    %c0 = arith.constant 0 : index
    %c0_0 = arith.constant 0 : index
    %0 = vector.load %arg1[%c0, %c0_0] : memref<8x1024xf32, #tpu.memory_space<vmem>>, vector<8x1024xf32>
    %c0_1 = arith.constant 0 : index
    %c0_2 = arith.constant 0 : index
    %1 = vector.load %arg2[%c0_1, %c0_2] : memref<1024x32xf32, #tpu.memory_space<vmem>>, vector<1024x32xf32>
    %cst = arith.constant dense<0.000000e+00> : vector<8x32xf32>
    %2 = tpu.matmul %0, %1, %cst {dimension_numbers = #tpu.dot_dimension_numbers<[1], [0], [0], [1], [0, 0, 1, 1], [], []>} : vector<8x1024xf32>, vector<1024x32xf32>, vector<8x32xf32> -> vector<8x32xf32>
    %c0_3 = arith.constant 0 : index
    %c0_4 = arith.constant 0 : index
    %3 = vector.load %arg3[%c0_3, %c0_4] : memref<1x32xf32, #tpu.memory_space<vmem>>, vector<1x32xf32>
    %4 = vector.broadcast %3 : vector<1x32xf32> to vector<8x32xf32>
    %5 = arith.addf %2, %4 : vector<8x32xf32>
    %c0_5 = arith.constant 0 : index
    %c0_6 = arith.constant 0 : index
    %6 = vector.load %arg4[%c0_5, %c0_6] : memref<32x128xf32, #tpu.memory_space<vmem>>, vector<32x128xf32>
    %cst_7 = arith.constant dense<0.000000e+00> : vector<8x128xf32>
    %7 = tpu.matmul %5, %6, %cst_7 {dimension_numbers = #tpu.dot_dimension_numbers<[1], [0], [0], [1], [0, 0, 1, 1], [], []>} : vector<8x32xf32>, vector<32x128xf32>, vector<8x128xf32> -> vector<8x128xf32>
    %c0_8 = arith.constant 0 : index
    %c0_9 = arith.constant 0 : index
    %8 = vector.load %arg6[%c0_8, %c0_9] : memref<1x128xf32, #tpu.memory_space<vmem>>, vector<1x128xf32>
    %9 = vector.broadcast %8 : vector<1x128xf32> to vector<8x128xf32>
    %10 = arith.addf %7, %9 : vector<8x128xf32>
    %cst_10 = arith.constant 0.000000e+00 : f32
    %11 = vector.broadcast %cst_10 : f32 to vector<1x32xf32>
    %cst_11 = arith.constant 0.000000e+00 : f32
    %12 = vector.broadcast %cst_11 : f32 to vector<1x32xf32>
    %13 = vector.extract_strided_slice %10 {offsets = [0, 0], sizes = [1, 128], strides = [1, 1]} : vector<8x128xf32> to vector<1x128xf32>
    %c0_12 = arith.constant 0 : index
    %c0_13 = arith.constant 0 : index
    %14 = vector.load %arg5[%c0_12, %c0_13] : memref<32x128xf32, #tpu.memory_space<vmem>>, vector<32x128xf32>
    %cst_14 = arith.constant dense<0.000000e+00> : vector<1x128xf32>
    %15 = tpu.matmul %11, %14, %cst_14 {dimension_numbers = #tpu.dot_dimension_numbers<[1], [0], [0], [1], [0, 0, 1, 1], [], []>} : vector<1x32xf32>, vector<32x128xf32>, vector<1x128xf32> -> vector<1x128xf32>
    %16 = arith.addf %13, %15 : vector<1x128xf32>
    %17 = vector.extract_strided_slice %16 {offsets = [0, 0], sizes = [1, 96], strides = [1, 1]} : vector<1x128xf32> to vector<1x96xf32>
    %18 = arith.negf %17 : vector<1x96xf32>
    %19 = math.exp %18 : vector<1x96xf32>
    %cst_15 = arith.constant 1.000000e+00 : f32
    %20 = vector.broadcast %cst_15 : f32 to vector<1x96xf32>
    %21 = arith.addf %20, %19 : vector<1x96xf32>
    %22 = arith.divf %20, %21 : vector<1x96xf32>
    %23 = vector.extract_strided_slice %22 {offsets = [0, 0], sizes = [1, 32], strides = [1, 1]} : vector<1x96xf32> to vector<1x32xf32>
    %24 = vector.extract_strided_slice %22 {offsets = [0, 32], sizes = [1, 32], strides = [1, 1]} : vector<1x96xf32> to vector<1x32xf32>
    %25 = vector.extract_strided_slice %22 {offsets = [0, 64], sizes = [1, 32], strides = [1, 1]} : vector<1x96xf32> to vector<1x32xf32>
    %26 = vector.extract_strided_slice %16 {offsets = [0, 96], sizes = [1, 32], strides = [1, 1]} : vector<1x128xf32> to vector<1x32xf32>
    %27 = math.tanh %26 : vector<1x32xf32>
    %28 = arith.mulf %24, %12 : vector<1x32xf32>
    %29 = arith.mulf %23, %27 : vector<1x32xf32>
    %30 = arith.addf %28, %29 : vector<1x32xf32>
    %31 = math.tanh %30 : vector<1x32xf32>
    %32 = arith.mulf %25, %31 : vector<1x32xf32>
    %33 = vector.extract_strided_slice %10 {offsets = [1, 0], sizes = [1, 128], strides = [1, 1]} : vector<8x128xf32> to vector<1x128xf32>
    %c0_16 = arith.constant 0 : index
    %c0_17 = arith.constant 0 : index
    %34 = vector.load %arg5[%c0_16, %c0_17] : memref<32x128xf32, #tpu.memory_space<vmem>>, vector<32x128xf32>
    %cst_18 = arith.constant dense<0.000000e+00> : vector<1x128xf32>
    %35 = tpu.matmul %32, %34, %cst_18 {dimension_numbers = #tpu.dot_dimension_numbers<[1], [0], [0], [1], [0, 0, 1, 1], [], []>} : vector<1x32xf32>, vector<32x128xf32>, vector<1x128xf32> -> vector<1x128xf32>
    %36 = arith.addf %33, %35 : vector<1x128xf32>
    %37 = vector.extract_strided_slice %36 {offsets = [0, 0], sizes = [1, 96], strides = [1, 1]} : vector<1x128xf32> to vector<1x96xf32>
    %38 = arith.negf %37 : vector<1x96xf32>
    %39 = math.exp %38 : vector<1x96xf32>
    %cst_19 = arith.constant 1.000000e+00 : f32
    %40 = vector.broadcast %cst_19 : f32 to vector<1x96xf32>
    %41 = arith.addf %40, %39 : vector<1x96xf32>
    %42 = arith.divf %40, %41 : vector<1x96xf32>
    %43 = vector.extract_strided_slice %42 {offsets = [0, 0], sizes = [1, 32], strides = [1, 1]} : vector<1x96xf32> to vector<1x32xf32>
    %44 = vector.extract_strided_slice %42 {offsets = [0, 32], sizes = [1, 32], strides = [1, 1]} : vector<1x96xf32> to vector<1x32xf32>
    %45 = vector.extract_strided_slice %42 {offsets = [0, 64], sizes = [1, 32], strides = [1, 1]} : vector<1x96xf32> to vector<1x32xf32>
    %46 = vector.extract_strided_slice %36 {offsets = [0, 96], sizes = [1, 32], strides = [1, 1]} : vector<1x128xf32> to vector<1x32xf32>
    %47 = math.tanh %46 : vector<1x32xf32>
    %48 = arith.mulf %44, %30 : vector<1x32xf32>
    %49 = arith.mulf %43, %47 : vector<1x32xf32>
    %50 = arith.addf %48, %49 : vector<1x32xf32>
    %51 = math.tanh %50 : vector<1x32xf32>
    %52 = arith.mulf %45, %51 : vector<1x32xf32>
    %53 = vector.extract_strided_slice %10 {offsets = [2, 0], sizes = [1, 128], strides = [1, 1]} : vector<8x128xf32> to vector<1x128xf32>
    %c0_20 = arith.constant 0 : index
    %c0_21 = arith.constant 0 : index
    %54 = vector.load %arg5[%c0_20, %c0_21] : memref<32x128xf32, #tpu.memory_space<vmem>>, vector<32x128xf32>
    %cst_22 = arith.constant dense<0.000000e+00> : vector<1x128xf32>
    %55 = tpu.matmul %52, %54, %cst_22 {dimension_numbers = #tpu.dot_dimension_numbers<[1], [0], [0], [1], [0, 0, 1, 1], [], []>} : vector<1x32xf32>, vector<32x128xf32>, vector<1x128xf32> -> vector<1x128xf32>
    %56 = arith.addf %53, %55 : vector<1x128xf32>
    %57 = vector.extract_strided_slice %56 {offsets = [0, 0], sizes = [1, 96], strides = [1, 1]} : vector<1x128xf32> to vector<1x96xf32>
    %58 = arith.negf %57 : vector<1x96xf32>
    %59 = math.exp %58 : vector<1x96xf32>
    %cst_23 = arith.constant 1.000000e+00 : f32
    %60 = vector.broadcast %cst_23 : f32 to vector<1x96xf32>
    %61 = arith.addf %60, %59 : vector<1x96xf32>
    %62 = arith.divf %60, %61 : vector<1x96xf32>
    %63 = vector.extract_strided_slice %62 {offsets = [0, 0], sizes = [1, 32], strides = [1, 1]} : vector<1x96xf32> to vector<1x32xf32>
    %64 = vector.extract_strided_slice %62 {offsets = [0, 32], sizes = [1, 32], strides = [1, 1]} : vector<1x96xf32> to vector<1x32xf32>
    %65 = vector.extract_strided_slice %62 {offsets = [0, 64], sizes = [1, 32], strides = [1, 1]} : vector<1x96xf32> to vector<1x32xf32>
    %66 = vector.extract_strided_slice %56 {offsets = [0, 96], sizes = [1, 32], strides = [1, 1]} : vector<1x128xf32> to vector<1x32xf32>
    %67 = math.tanh %66 : vector<1x32xf32>
    %68 = arith.mulf %64, %50 : vector<1x32xf32>
    %69 = arith.mulf %63, %67 : vector<1x32xf32>
    %70 = arith.addf %68, %69 : vector<1x32xf32>
    %71 = math.tanh %70 : vector<1x32xf32>
    %72 = arith.mulf %65, %71 : vector<1x32xf32>
    %73 = vector.extract_strided_slice %10 {offsets = [3, 0], sizes = [1, 128], strides = [1, 1]} : vector<8x128xf32> to vector<1x128xf32>
    %c0_24 = arith.constant 0 : index
    %c0_25 = arith.constant 0 : index
    %74 = vector.load %arg5[%c0_24, %c0_25] : memref<32x128xf32, #tpu.memory_space<vmem>>, vector<32x128xf32>
    %cst_26 = arith.constant dense<0.000000e+00> : vector<1x128xf32>
    %75 = tpu.matmul %72, %74, %cst_26 {dimension_numbers = #tpu.dot_dimension_numbers<[1], [0], [0], [1], [0, 0, 1, 1], [], []>} : vector<1x32xf32>, vector<32x128xf32>, vector<1x128xf32> -> vector<1x128xf32>
    %76 = arith.addf %73, %75 : vector<1x128xf32>
    %77 = vector.extract_strided_slice %76 {offsets = [0, 0], sizes = [1, 96], strides = [1, 1]} : vector<1x128xf32> to vector<1x96xf32>
    %78 = arith.negf %77 : vector<1x96xf32>
    %79 = math.exp %78 : vector<1x96xf32>
    %cst_27 = arith.constant 1.000000e+00 : f32
    %80 = vector.broadcast %cst_27 : f32 to vector<1x96xf32>
    %81 = arith.addf %80, %79 : vector<1x96xf32>
    %82 = arith.divf %80, %81 : vector<1x96xf32>
    %83 = vector.extract_strided_slice %82 {offsets = [0, 0], sizes = [1, 32], strides = [1, 1]} : vector<1x96xf32> to vector<1x32xf32>
    %84 = vector.extract_strided_slice %82 {offsets = [0, 32], sizes = [1, 32], strides = [1, 1]} : vector<1x96xf32> to vector<1x32xf32>
    %85 = vector.extract_strided_slice %82 {offsets = [0, 64], sizes = [1, 32], strides = [1, 1]} : vector<1x96xf32> to vector<1x32xf32>
    %86 = vector.extract_strided_slice %76 {offsets = [0, 96], sizes = [1, 32], strides = [1, 1]} : vector<1x128xf32> to vector<1x32xf32>
    %87 = math.tanh %86 : vector<1x32xf32>
    %88 = arith.mulf %84, %70 : vector<1x32xf32>
    %89 = arith.mulf %83, %87 : vector<1x32xf32>
    %90 = arith.addf %88, %89 : vector<1x32xf32>
    %91 = math.tanh %90 : vector<1x32xf32>
    %92 = arith.mulf %85, %91 : vector<1x32xf32>
    %93 = vector.extract_strided_slice %10 {offsets = [4, 0], sizes = [1, 128], strides = [1, 1]} : vector<8x128xf32> to vector<1x128xf32>
    %c0_28 = arith.constant 0 : index
    %c0_29 = arith.constant 0 : index
    %94 = vector.load %arg5[%c0_28, %c0_29] : memref<32x128xf32, #tpu.memory_space<vmem>>, vector<32x128xf32>
    %cst_30 = arith.constant dense<0.000000e+00> : vector<1x128xf32>
    %95 = tpu.matmul %92, %94, %cst_30 {dimension_numbers = #tpu.dot_dimension_numbers<[1], [0], [0], [1], [0, 0, 1, 1], [], []>} : vector<1x32xf32>, vector<32x128xf32>, vector<1x128xf32> -> vector<1x128xf32>
    %96 = arith.addf %93, %95 : vector<1x128xf32>
    %97 = vector.extract_strided_slice %96 {offsets = [0, 0], sizes = [1, 96], strides = [1, 1]} : vector<1x128xf32> to vector<1x96xf32>
    %98 = arith.negf %97 : vector<1x96xf32>
    %99 = math.exp %98 : vector<1x96xf32>
    %cst_31 = arith.constant 1.000000e+00 : f32
    %100 = vector.broadcast %cst_31 : f32 to vector<1x96xf32>
    %101 = arith.addf %100, %99 : vector<1x96xf32>
    %102 = arith.divf %100, %101 : vector<1x96xf32>
    %103 = vector.extract_strided_slice %102 {offsets = [0, 0], sizes = [1, 32], strides = [1, 1]} : vector<1x96xf32> to vector<1x32xf32>
    %104 = vector.extract_strided_slice %102 {offsets = [0, 32], sizes = [1, 32], strides = [1, 1]} : vector<1x96xf32> to vector<1x32xf32>
    %105 = vector.extract_strided_slice %102 {offsets = [0, 64], sizes = [1, 32], strides = [1, 1]} : vector<1x96xf32> to vector<1x32xf32>
    %106 = vector.extract_strided_slice %96 {offsets = [0, 96], sizes = [1, 32], strides = [1, 1]} : vector<1x128xf32> to vector<1x32xf32>
    %107 = math.tanh %106 : vector<1x32xf32>
    %108 = arith.mulf %104, %90 : vector<1x32xf32>
    %109 = arith.mulf %103, %107 : vector<1x32xf32>
    %110 = arith.addf %108, %109 : vector<1x32xf32>
    %111 = math.tanh %110 : vector<1x32xf32>
    %112 = arith.mulf %105, %111 : vector<1x32xf32>
    %113 = vector.extract_strided_slice %10 {offsets = [5, 0], sizes = [1, 128], strides = [1, 1]} : vector<8x128xf32> to vector<1x128xf32>
    %c0_32 = arith.constant 0 : index
    %c0_33 = arith.constant 0 : index
    %114 = vector.load %arg5[%c0_32, %c0_33] : memref<32x128xf32, #tpu.memory_space<vmem>>, vector<32x128xf32>
    %cst_34 = arith.constant dense<0.000000e+00> : vector<1x128xf32>
    %115 = tpu.matmul %112, %114, %cst_34 {dimension_numbers = #tpu.dot_dimension_numbers<[1], [0], [0], [1], [0, 0, 1, 1], [], []>} : vector<1x32xf32>, vector<32x128xf32>, vector<1x128xf32> -> vector<1x128xf32>
    %116 = arith.addf %113, %115 : vector<1x128xf32>
    %117 = vector.extract_strided_slice %116 {offsets = [0, 0], sizes = [1, 96], strides = [1, 1]} : vector<1x128xf32> to vector<1x96xf32>
    %118 = arith.negf %117 : vector<1x96xf32>
    %119 = math.exp %118 : vector<1x96xf32>
    %cst_35 = arith.constant 1.000000e+00 : f32
    %120 = vector.broadcast %cst_35 : f32 to vector<1x96xf32>
    %121 = arith.addf %120, %119 : vector<1x96xf32>
    %122 = arith.divf %120, %121 : vector<1x96xf32>
    %123 = vector.extract_strided_slice %122 {offsets = [0, 0], sizes = [1, 32], strides = [1, 1]} : vector<1x96xf32> to vector<1x32xf32>
    %124 = vector.extract_strided_slice %122 {offsets = [0, 32], sizes = [1, 32], strides = [1, 1]} : vector<1x96xf32> to vector<1x32xf32>
    %125 = vector.extract_strided_slice %122 {offsets = [0, 64], sizes = [1, 32], strides = [1, 1]} : vector<1x96xf32> to vector<1x32xf32>
    %126 = vector.extract_strided_slice %116 {offsets = [0, 96], sizes = [1, 32], strides = [1, 1]} : vector<1x128xf32> to vector<1x32xf32>
    %127 = math.tanh %126 : vector<1x32xf32>
    %128 = arith.mulf %124, %110 : vector<1x32xf32>
    %129 = arith.mulf %123, %127 : vector<1x32xf32>
    %130 = arith.addf %128, %129 : vector<1x32xf32>
    %131 = math.tanh %130 : vector<1x32xf32>
    %132 = arith.mulf %125, %131 : vector<1x32xf32>
    %133 = vector.extract_strided_slice %10 {offsets = [6, 0], sizes = [1, 128], strides = [1, 1]} : vector<8x128xf32> to vector<1x128xf32>
    %c0_36 = arith.constant 0 : index
    %c0_37 = arith.constant 0 : index
    %134 = vector.load %arg5[%c0_36, %c0_37] : memref<32x128xf32, #tpu.memory_space<vmem>>, vector<32x128xf32>
    %cst_38 = arith.constant dense<0.000000e+00> : vector<1x128xf32>
    %135 = tpu.matmul %132, %134, %cst_38 {dimension_numbers = #tpu.dot_dimension_numbers<[1], [0], [0], [1], [0, 0, 1, 1], [], []>} : vector<1x32xf32>, vector<32x128xf32>, vector<1x128xf32> -> vector<1x128xf32>
    %136 = arith.addf %133, %135 : vector<1x128xf32>
    %137 = vector.extract_strided_slice %136 {offsets = [0, 0], sizes = [1, 96], strides = [1, 1]} : vector<1x128xf32> to vector<1x96xf32>
    %138 = arith.negf %137 : vector<1x96xf32>
    %139 = math.exp %138 : vector<1x96xf32>
    %cst_39 = arith.constant 1.000000e+00 : f32
    %140 = vector.broadcast %cst_39 : f32 to vector<1x96xf32>
    %141 = arith.addf %140, %139 : vector<1x96xf32>
    %142 = arith.divf %140, %141 : vector<1x96xf32>
    %143 = vector.extract_strided_slice %142 {offsets = [0, 0], sizes = [1, 32], strides = [1, 1]} : vector<1x96xf32> to vector<1x32xf32>
    %144 = vector.extract_strided_slice %142 {offsets = [0, 32], sizes = [1, 32], strides = [1, 1]} : vector<1x96xf32> to vector<1x32xf32>
    %145 = vector.extract_strided_slice %142 {offsets = [0, 64], sizes = [1, 32], strides = [1, 1]} : vector<1x96xf32> to vector<1x32xf32>
    %146 = vector.extract_strided_slice %136 {offsets = [0, 96], sizes = [1, 32], strides = [1, 1]} : vector<1x128xf32> to vector<1x32xf32>
    %147 = math.tanh %146 : vector<1x32xf32>
    %148 = arith.mulf %144, %130 : vector<1x32xf32>
    %149 = arith.mulf %143, %147 : vector<1x32xf32>
    %150 = arith.addf %148, %149 : vector<1x32xf32>
    %151 = math.tanh %150 : vector<1x32xf32>
    %152 = arith.mulf %145, %151 : vector<1x32xf32>
    %153 = vector.extract_strided_slice %10 {offsets = [7, 0], sizes = [1, 128], strides = [1, 1]} : vector<8x128xf32> to vector<1x128xf32>
    %c0_40 = arith.constant 0 : index
    %c0_41 = arith.constant 0 : index
    %154 = vector.load %arg5[%c0_40, %c0_41] : memref<32x128xf32, #tpu.memory_space<vmem>>, vector<32x128xf32>
    %cst_42 = arith.constant dense<0.000000e+00> : vector<1x128xf32>
    %155 = tpu.matmul %152, %154, %cst_42 {dimension_numbers = #tpu.dot_dimension_numbers<[1], [0], [0], [1], [0, 0, 1, 1], [], []>} : vector<1x32xf32>, vector<32x128xf32>, vector<1x128xf32> -> vector<1x128xf32>
    %156 = arith.addf %153, %155 : vector<1x128xf32>
    %157 = vector.extract_strided_slice %156 {offsets = [0, 0], sizes = [1, 96], strides = [1, 1]} : vector<1x128xf32> to vector<1x96xf32>
    %158 = arith.negf %157 : vector<1x96xf32>
    %159 = math.exp %158 : vector<1x96xf32>
    %cst_43 = arith.constant 1.000000e+00 : f32
    %160 = vector.broadcast %cst_43 : f32 to vector<1x96xf32>
    %161 = arith.addf %160, %159 : vector<1x96xf32>
    %162 = arith.divf %160, %161 : vector<1x96xf32>
    %163 = vector.extract_strided_slice %162 {offsets = [0, 0], sizes = [1, 32], strides = [1, 1]} : vector<1x96xf32> to vector<1x32xf32>
    %164 = vector.extract_strided_slice %162 {offsets = [0, 32], sizes = [1, 32], strides = [1, 1]} : vector<1x96xf32> to vector<1x32xf32>
    %165 = vector.extract_strided_slice %162 {offsets = [0, 64], sizes = [1, 32], strides = [1, 1]} : vector<1x96xf32> to vector<1x32xf32>
    %166 = vector.extract_strided_slice %156 {offsets = [0, 96], sizes = [1, 32], strides = [1, 1]} : vector<1x128xf32> to vector<1x32xf32>
    %167 = math.tanh %166 : vector<1x32xf32>
    %168 = arith.mulf %164, %150 : vector<1x32xf32>
    %169 = arith.mulf %163, %167 : vector<1x32xf32>
    %170 = arith.addf %168, %169 : vector<1x32xf32>
    %171 = math.tanh %170 : vector<1x32xf32>
    %172 = arith.mulf %165, %171 : vector<1x32xf32>
    %173 = tpu.concatenate %32, %52, %72, %92, %112, %132, %152, %172 in 0 : vector<1x32xf32>, vector<1x32xf32>, vector<1x32xf32>, vector<1x32xf32>, vector<1x32xf32>, vector<1x32xf32>, vector<1x32xf32>, vector<1x32xf32> -> vector<8x32xf32>
    %c0_44 = arith.constant 0 : index
    %c0_45 = arith.constant 0 : index
    %174 = vector.load %arg7[%c0_44, %c0_45] : memref<32x128xf32, #tpu.memory_space<vmem>>, vector<32x128xf32>
    %cst_46 = arith.constant dense<0.000000e+00> : vector<8x128xf32>
    %175 = tpu.matmul %173, %174, %cst_46 {dimension_numbers = #tpu.dot_dimension_numbers<[1], [0], [0], [1], [0, 0, 1, 1], [], []>} : vector<8x32xf32>, vector<32x128xf32>, vector<8x128xf32> -> vector<8x128xf32>
    %c0_47 = arith.constant 0 : index
    %c0_48 = arith.constant 0 : index
    %176 = vector.load %arg9[%c0_47, %c0_48] : memref<1x128xf32, #tpu.memory_space<vmem>>, vector<1x128xf32>
    %177 = vector.broadcast %176 : vector<1x128xf32> to vector<8x128xf32>
    %178 = arith.addf %175, %177 : vector<8x128xf32>
    %cst_49 = arith.constant 0.000000e+00 : f32
    %179 = vector.broadcast %cst_49 : f32 to vector<1x32xf32>
    %cst_50 = arith.constant 0.000000e+00 : f32
    %180 = vector.broadcast %cst_50 : f32 to vector<1x32xf32>
    %181 = vector.extract_strided_slice %178 {offsets = [0, 0], sizes = [1, 128], strides = [1, 1]} : vector<8x128xf32> to vector<1x128xf32>
    %c0_51 = arith.constant 0 : index
    %c0_52 = arith.constant 0 : index
    %182 = vector.load %arg8[%c0_51, %c0_52] : memref<32x128xf32, #tpu.memory_space<vmem>>, vector<32x128xf32>
    %cst_53 = arith.constant dense<0.000000e+00> : vector<1x128xf32>
    %183 = tpu.matmul %179, %182, %cst_53 {dimension_numbers = #tpu.dot_dimension_numbers<[1], [0], [0], [1], [0, 0, 1, 1], [], []>} : vector<1x32xf32>, vector<32x128xf32>, vector<1x128xf32> -> vector<1x128xf32>
    %184 = arith.addf %181, %183 : vector<1x128xf32>
    %185 = vector.extract_strided_slice %184 {offsets = [0, 0], sizes = [1, 96], strides = [1, 1]} : vector<1x128xf32> to vector<1x96xf32>
    %186 = arith.negf %185 : vector<1x96xf32>
    %187 = math.exp %186 : vector<1x96xf32>
    %cst_54 = arith.constant 1.000000e+00 : f32
    %188 = vector.broadcast %cst_54 : f32 to vector<1x96xf32>
    %189 = arith.addf %188, %187 : vector<1x96xf32>
    %190 = arith.divf %188, %189 : vector<1x96xf32>
    %191 = vector.extract_strided_slice %190 {offsets = [0, 0], sizes = [1, 32], strides = [1, 1]} : vector<1x96xf32> to vector<1x32xf32>
    %192 = vector.extract_strided_slice %190 {offsets = [0, 32], sizes = [1, 32], strides = [1, 1]} : vector<1x96xf32> to vector<1x32xf32>
    %193 = vector.extract_strided_slice %190 {offsets = [0, 64], sizes = [1, 32], strides = [1, 1]} : vector<1x96xf32> to vector<1x32xf32>
    %194 = vector.extract_strided_slice %184 {offsets = [0, 96], sizes = [1, 32], strides = [1, 1]} : vector<1x128xf32> to vector<1x32xf32>
    %195 = math.tanh %194 : vector<1x32xf32>
    %196 = arith.mulf %192, %180 : vector<1x32xf32>
    %197 = arith.mulf %191, %195 : vector<1x32xf32>
    %198 = arith.addf %196, %197 : vector<1x32xf32>
    %199 = math.tanh %198 : vector<1x32xf32>
    %200 = arith.mulf %193, %199 : vector<1x32xf32>
    %201 = vector.extract_strided_slice %178 {offsets = [1, 0], sizes = [1, 128], strides = [1, 1]} : vector<8x128xf32> to vector<1x128xf32>
    %c0_55 = arith.constant 0 : index
    %c0_56 = arith.constant 0 : index
    %202 = vector.load %arg8[%c0_55, %c0_56] : memref<32x128xf32, #tpu.memory_space<vmem>>, vector<32x128xf32>
    %cst_57 = arith.constant dense<0.000000e+00> : vector<1x128xf32>
    %203 = tpu.matmul %200, %202, %cst_57 {dimension_numbers = #tpu.dot_dimension_numbers<[1], [0], [0], [1], [0, 0, 1, 1], [], []>} : vector<1x32xf32>, vector<32x128xf32>, vector<1x128xf32> -> vector<1x128xf32>
    %204 = arith.addf %201, %203 : vector<1x128xf32>
    %205 = vector.extract_strided_slice %204 {offsets = [0, 0], sizes = [1, 96], strides = [1, 1]} : vector<1x128xf32> to vector<1x96xf32>
    %206 = arith.negf %205 : vector<1x96xf32>
    %207 = math.exp %206 : vector<1x96xf32>
    %cst_58 = arith.constant 1.000000e+00 : f32
    %208 = vector.broadcast %cst_58 : f32 to vector<1x96xf32>
    %209 = arith.addf %208, %207 : vector<1x96xf32>
    %210 = arith.divf %208, %209 : vector<1x96xf32>
    %211 = vector.extract_strided_slice %210 {offsets = [0, 0], sizes = [1, 32], strides = [1, 1]} : vector<1x96xf32> to vector<1x32xf32>
    %212 = vector.extract_strided_slice %210 {offsets = [0, 32], sizes = [1, 32], strides = [1, 1]} : vector<1x96xf32> to vector<1x32xf32>
    %213 = vector.extract_strided_slice %210 {offsets = [0, 64], sizes = [1, 32], strides = [1, 1]} : vector<1x96xf32> to vector<1x32xf32>
    %214 = vector.extract_strided_slice %204 {offsets = [0, 96], sizes = [1, 32], strides = [1, 1]} : vector<1x128xf32> to vector<1x32xf32>
    %215 = math.tanh %214 : vector<1x32xf32>
    %216 = arith.mulf %212, %198 : vector<1x32xf32>
    %217 = arith.mulf %211, %215 : vector<1x32xf32>
    %218 = arith.addf %216, %217 : vector<1x32xf32>
    %219 = math.tanh %218 : vector<1x32xf32>
    %220 = arith.mulf %213, %219 : vector<1x32xf32>
    %221 = vector.extract_strided_slice %178 {offsets = [2, 0], sizes = [1, 128], strides = [1, 1]} : vector<8x128xf32> to vector<1x128xf32>
    %c0_59 = arith.constant 0 : index
    %c0_60 = arith.constant 0 : index
    %222 = vector.load %arg8[%c0_59, %c0_60] : memref<32x128xf32, #tpu.memory_space<vmem>>, vector<32x128xf32>
    %cst_61 = arith.constant dense<0.000000e+00> : vector<1x128xf32>
    %223 = tpu.matmul %220, %222, %cst_61 {dimension_numbers = #tpu.dot_dimension_numbers<[1], [0], [0], [1], [0, 0, 1, 1], [], []>} : vector<1x32xf32>, vector<32x128xf32>, vector<1x128xf32> -> vector<1x128xf32>
    %224 = arith.addf %221, %223 : vector<1x128xf32>
    %225 = vector.extract_strided_slice %224 {offsets = [0, 0], sizes = [1, 96], strides = [1, 1]} : vector<1x128xf32> to vector<1x96xf32>
    %226 = arith.negf %225 : vector<1x96xf32>
    %227 = math.exp %226 : vector<1x96xf32>
    %cst_62 = arith.constant 1.000000e+00 : f32
    %228 = vector.broadcast %cst_62 : f32 to vector<1x96xf32>
    %229 = arith.addf %228, %227 : vector<1x96xf32>
    %230 = arith.divf %228, %229 : vector<1x96xf32>
    %231 = vector.extract_strided_slice %230 {offsets = [0, 0], sizes = [1, 32], strides = [1, 1]} : vector<1x96xf32> to vector<1x32xf32>
    %232 = vector.extract_strided_slice %230 {offsets = [0, 32], sizes = [1, 32], strides = [1, 1]} : vector<1x96xf32> to vector<1x32xf32>
    %233 = vector.extract_strided_slice %230 {offsets = [0, 64], sizes = [1, 32], strides = [1, 1]} : vector<1x96xf32> to vector<1x32xf32>
    %234 = vector.extract_strided_slice %224 {offsets = [0, 96], sizes = [1, 32], strides = [1, 1]} : vector<1x128xf32> to vector<1x32xf32>
    %235 = math.tanh %234 : vector<1x32xf32>
    %236 = arith.mulf %232, %218 : vector<1x32xf32>
    %237 = arith.mulf %231, %235 : vector<1x32xf32>
    %238 = arith.addf %236, %237 : vector<1x32xf32>
    %239 = math.tanh %238 : vector<1x32xf32>
    %240 = arith.mulf %233, %239 : vector<1x32xf32>
    %241 = vector.extract_strided_slice %178 {offsets = [3, 0], sizes = [1, 128], strides = [1, 1]} : vector<8x128xf32> to vector<1x128xf32>
    %c0_63 = arith.constant 0 : index
    %c0_64 = arith.constant 0 : index
    %242 = vector.load %arg8[%c0_63, %c0_64] : memref<32x128xf32, #tpu.memory_space<vmem>>, vector<32x128xf32>
    %cst_65 = arith.constant dense<0.000000e+00> : vector<1x128xf32>
    %243 = tpu.matmul %240, %242, %cst_65 {dimension_numbers = #tpu.dot_dimension_numbers<[1], [0], [0], [1], [0, 0, 1, 1], [], []>} : vector<1x32xf32>, vector<32x128xf32>, vector<1x128xf32> -> vector<1x128xf32>
    %244 = arith.addf %241, %243 : vector<1x128xf32>
    %245 = vector.extract_strided_slice %244 {offsets = [0, 0], sizes = [1, 96], strides = [1, 1]} : vector<1x128xf32> to vector<1x96xf32>
    %246 = arith.negf %245 : vector<1x96xf32>
    %247 = math.exp %246 : vector<1x96xf32>
    %cst_66 = arith.constant 1.000000e+00 : f32
    %248 = vector.broadcast %cst_66 : f32 to vector<1x96xf32>
    %249 = arith.addf %248, %247 : vector<1x96xf32>
    %250 = arith.divf %248, %249 : vector<1x96xf32>
    %251 = vector.extract_strided_slice %250 {offsets = [0, 0], sizes = [1, 32], strides = [1, 1]} : vector<1x96xf32> to vector<1x32xf32>
    %252 = vector.extract_strided_slice %250 {offsets = [0, 32], sizes = [1, 32], strides = [1, 1]} : vector<1x96xf32> to vector<1x32xf32>
    %253 = vector.extract_strided_slice %250 {offsets = [0, 64], sizes = [1, 32], strides = [1, 1]} : vector<1x96xf32> to vector<1x32xf32>
    %254 = vector.extract_strided_slice %244 {offsets = [0, 96], sizes = [1, 32], strides = [1, 1]} : vector<1x128xf32> to vector<1x32xf32>
    %255 = math.tanh %254 : vector<1x32xf32>
    %256 = arith.mulf %252, %238 : vector<1x32xf32>
    %257 = arith.mulf %251, %255 : vector<1x32xf32>
    %258 = arith.addf %256, %257 : vector<1x32xf32>
    %259 = math.tanh %258 : vector<1x32xf32>
    %260 = arith.mulf %253, %259 : vector<1x32xf32>
    %261 = vector.extract_strided_slice %178 {offsets = [4, 0], sizes = [1, 128], strides = [1, 1]} : vector<8x128xf32> to vector<1x128xf32>
    %c0_67 = arith.constant 0 : index
    %c0_68 = arith.constant 0 : index
    %262 = vector.load %arg8[%c0_67, %c0_68] : memref<32x128xf32, #tpu.memory_space<vmem>>, vector<32x128xf32>
    %cst_69 = arith.constant dense<0.000000e+00> : vector<1x128xf32>
    %263 = tpu.matmul %260, %262, %cst_69 {dimension_numbers = #tpu.dot_dimension_numbers<[1], [0], [0], [1], [0, 0, 1, 1], [], []>} : vector<1x32xf32>, vector<32x128xf32>, vector<1x128xf32> -> vector<1x128xf32>
    %264 = arith.addf %261, %263 : vector<1x128xf32>
    %265 = vector.extract_strided_slice %264 {offsets = [0, 0], sizes = [1, 96], strides = [1, 1]} : vector<1x128xf32> to vector<1x96xf32>
    %266 = arith.negf %265 : vector<1x96xf32>
    %267 = math.exp %266 : vector<1x96xf32>
    %cst_70 = arith.constant 1.000000e+00 : f32
    %268 = vector.broadcast %cst_70 : f32 to vector<1x96xf32>
    %269 = arith.addf %268, %267 : vector<1x96xf32>
    %270 = arith.divf %268, %269 : vector<1x96xf32>
    %271 = vector.extract_strided_slice %270 {offsets = [0, 0], sizes = [1, 32], strides = [1, 1]} : vector<1x96xf32> to vector<1x32xf32>
    %272 = vector.extract_strided_slice %270 {offsets = [0, 32], sizes = [1, 32], strides = [1, 1]} : vector<1x96xf32> to vector<1x32xf32>
    %273 = vector.extract_strided_slice %270 {offsets = [0, 64], sizes = [1, 32], strides = [1, 1]} : vector<1x96xf32> to vector<1x32xf32>
    %274 = vector.extract_strided_slice %264 {offsets = [0, 96], sizes = [1, 32], strides = [1, 1]} : vector<1x128xf32> to vector<1x32xf32>
    %275 = math.tanh %274 : vector<1x32xf32>
    %276 = arith.mulf %272, %258 : vector<1x32xf32>
    %277 = arith.mulf %271, %275 : vector<1x32xf32>
    %278 = arith.addf %276, %277 : vector<1x32xf32>
    %279 = math.tanh %278 : vector<1x32xf32>
    %280 = arith.mulf %273, %279 : vector<1x32xf32>
    %281 = vector.extract_strided_slice %178 {offsets = [5, 0], sizes = [1, 128], strides = [1, 1]} : vector<8x128xf32> to vector<1x128xf32>
    %c0_71 = arith.constant 0 : index
    %c0_72 = arith.constant 0 : index
    %282 = vector.load %arg8[%c0_71, %c0_72] : memref<32x128xf32, #tpu.memory_space<vmem>>, vector<32x128xf32>
    %cst_73 = arith.constant dense<0.000000e+00> : vector<1x128xf32>
    %283 = tpu.matmul %280, %282, %cst_73 {dimension_numbers = #tpu.dot_dimension_numbers<[1], [0], [0], [1], [0, 0, 1, 1], [], []>} : vector<1x32xf32>, vector<32x128xf32>, vector<1x128xf32> -> vector<1x128xf32>
    %284 = arith.addf %281, %283 : vector<1x128xf32>
    %285 = vector.extract_strided_slice %284 {offsets = [0, 0], sizes = [1, 96], strides = [1, 1]} : vector<1x128xf32> to vector<1x96xf32>
    %286 = arith.negf %285 : vector<1x96xf32>
    %287 = math.exp %286 : vector<1x96xf32>
    %cst_74 = arith.constant 1.000000e+00 : f32
    %288 = vector.broadcast %cst_74 : f32 to vector<1x96xf32>
    %289 = arith.addf %288, %287 : vector<1x96xf32>
    %290 = arith.divf %288, %289 : vector<1x96xf32>
    %291 = vector.extract_strided_slice %290 {offsets = [0, 0], sizes = [1, 32], strides = [1, 1]} : vector<1x96xf32> to vector<1x32xf32>
    %292 = vector.extract_strided_slice %290 {offsets = [0, 32], sizes = [1, 32], strides = [1, 1]} : vector<1x96xf32> to vector<1x32xf32>
    %293 = vector.extract_strided_slice %290 {offsets = [0, 64], sizes = [1, 32], strides = [1, 1]} : vector<1x96xf32> to vector<1x32xf32>
    %294 = vector.extract_strided_slice %284 {offsets = [0, 96], sizes = [1, 32], strides = [1, 1]} : vector<1x128xf32> to vector<1x32xf32>
    %295 = math.tanh %294 : vector<1x32xf32>
    %296 = arith.mulf %292, %278 : vector<1x32xf32>
    %297 = arith.mulf %291, %295 : vector<1x32xf32>
    %298 = arith.addf %296, %297 : vector<1x32xf32>
    %299 = math.tanh %298 : vector<1x32xf32>
    %300 = arith.mulf %293, %299 : vector<1x32xf32>
    %301 = vector.extract_strided_slice %178 {offsets = [6, 0], sizes = [1, 128], strides = [1, 1]} : vector<8x128xf32> to vector<1x128xf32>
    %c0_75 = arith.constant 0 : index
    %c0_76 = arith.constant 0 : index
    %302 = vector.load %arg8[%c0_75, %c0_76] : memref<32x128xf32, #tpu.memory_space<vmem>>, vector<32x128xf32>
    %cst_77 = arith.constant dense<0.000000e+00> : vector<1x128xf32>
    %303 = tpu.matmul %300, %302, %cst_77 {dimension_numbers = #tpu.dot_dimension_numbers<[1], [0], [0], [1], [0, 0, 1, 1], [], []>} : vector<1x32xf32>, vector<32x128xf32>, vector<1x128xf32> -> vector<1x128xf32>
    %304 = arith.addf %301, %303 : vector<1x128xf32>
    %305 = vector.extract_strided_slice %304 {offsets = [0, 0], sizes = [1, 96], strides = [1, 1]} : vector<1x128xf32> to vector<1x96xf32>
    %306 = arith.negf %305 : vector<1x96xf32>
    %307 = math.exp %306 : vector<1x96xf32>
    %cst_78 = arith.constant 1.000000e+00 : f32
    %308 = vector.broadcast %cst_78 : f32 to vector<1x96xf32>
    %309 = arith.addf %308, %307 : vector<1x96xf32>
    %310 = arith.divf %308, %309 : vector<1x96xf32>
    %311 = vector.extract_strided_slice %310 {offsets = [0, 0], sizes = [1, 32], strides = [1, 1]} : vector<1x96xf32> to vector<1x32xf32>
    %312 = vector.extract_strided_slice %310 {offsets = [0, 32], sizes = [1, 32], strides = [1, 1]} : vector<1x96xf32> to vector<1x32xf32>
    %313 = vector.extract_strided_slice %310 {offsets = [0, 64], sizes = [1, 32], strides = [1, 1]} : vector<1x96xf32> to vector<1x32xf32>
    %314 = vector.extract_strided_slice %304 {offsets = [0, 96], sizes = [1, 32], strides = [1, 1]} : vector<1x128xf32> to vector<1x32xf32>
    %315 = math.tanh %314 : vector<1x32xf32>
    %316 = arith.mulf %312, %298 : vector<1x32xf32>
    %317 = arith.mulf %311, %315 : vector<1x32xf32>
    %318 = arith.addf %316, %317 : vector<1x32xf32>
    %319 = math.tanh %318 : vector<1x32xf32>
    %320 = arith.mulf %313, %319 : vector<1x32xf32>
    %321 = vector.extract_strided_slice %178 {offsets = [7, 0], sizes = [1, 128], strides = [1, 1]} : vector<8x128xf32> to vector<1x128xf32>
    %c0_79 = arith.constant 0 : index
    %c0_80 = arith.constant 0 : index
    %322 = vector.load %arg8[%c0_79, %c0_80] : memref<32x128xf32, #tpu.memory_space<vmem>>, vector<32x128xf32>
    %cst_81 = arith.constant dense<0.000000e+00> : vector<1x128xf32>
    %323 = tpu.matmul %320, %322, %cst_81 {dimension_numbers = #tpu.dot_dimension_numbers<[1], [0], [0], [1], [0, 0, 1, 1], [], []>} : vector<1x32xf32>, vector<32x128xf32>, vector<1x128xf32> -> vector<1x128xf32>
    %324 = arith.addf %321, %323 : vector<1x128xf32>
    %325 = vector.extract_strided_slice %324 {offsets = [0, 0], sizes = [1, 96], strides = [1, 1]} : vector<1x128xf32> to vector<1x96xf32>
    %326 = arith.negf %325 : vector<1x96xf32>
    %327 = math.exp %326 : vector<1x96xf32>
    %cst_82 = arith.constant 1.000000e+00 : f32
    %328 = vector.broadcast %cst_82 : f32 to vector<1x96xf32>
    %329 = arith.addf %328, %327 : vector<1x96xf32>
    %330 = arith.divf %328, %329 : vector<1x96xf32>
    %331 = vector.extract_strided_slice %330 {offsets = [0, 0], sizes = [1, 32], strides = [1, 1]} : vector<1x96xf32> to vector<1x32xf32>
    %332 = vector.extract_strided_slice %330 {offsets = [0, 32], sizes = [1, 32], strides = [1, 1]} : vector<1x96xf32> to vector<1x32xf32>
    %333 = vector.extract_strided_slice %330 {offsets = [0, 64], sizes = [1, 32], strides = [1, 1]} : vector<1x96xf32> to vector<1x32xf32>
    %334 = vector.extract_strided_slice %324 {offsets = [0, 96], sizes = [1, 32], strides = [1, 1]} : vector<1x128xf32> to vector<1x32xf32>
    %335 = math.tanh %334 : vector<1x32xf32>
    %336 = arith.mulf %332, %318 : vector<1x32xf32>
    %337 = arith.mulf %331, %335 : vector<1x32xf32>
    %338 = arith.addf %336, %337 : vector<1x32xf32>
    %339 = math.tanh %338 : vector<1x32xf32>
    %340 = arith.mulf %333, %339 : vector<1x32xf32>
    %341 = tpu.concatenate %200, %220, %240, %260, %280, %300, %320, %340 in 0 : vector<1x32xf32>, vector<1x32xf32>, vector<1x32xf32>, vector<1x32xf32>, vector<1x32xf32>, vector<1x32xf32>, vector<1x32xf32>, vector<1x32xf32> -> vector<8x32xf32>
    %c0_83 = arith.constant 0 : index
    %c0_84 = arith.constant 0 : index
    %342 = vector.load %arg10[%c0_83, %c0_84] : memref<32x10xf32, #tpu.memory_space<vmem>>, vector<32x10xf32>
    %cst_85 = arith.constant dense<0.000000e+00> : vector<8x10xf32>
    %343 = tpu.matmul %341, %342, %cst_85 {dimension_numbers = #tpu.dot_dimension_numbers<[1], [0], [0], [1], [0, 0, 1, 1], [], []>} : vector<8x32xf32>, vector<32x10xf32>, vector<8x10xf32> -> vector<8x10xf32>
    %c0_86 = arith.constant 0 : index
    %c0_87 = arith.constant 0 : index
    %344 = vector.load %arg11[%c0_86, %c0_87] : memref<1x10xf32, #tpu.memory_space<vmem>>, vector<1x10xf32>
    %345 = vector.broadcast %344 : vector<1x10xf32> to vector<8x10xf32>
    %346 = arith.addf %343, %345 : vector<8x10xf32>
    %c0_88 = arith.constant 0 : index
    %c0_89 = arith.constant 0 : index
    %347 = vector.load %arg13[%c0_88, %c0_89] : memref<8x10xf32, #tpu.memory_space<vmem>>, vector<8x10xf32>
    tpu.vector_store %arg13[%c0_88, %c0_89], %346 {strides = array<i32>} : memref<8x10xf32, #tpu.memory_space<vmem>>, vector<8x10xf32>,
    %cst_90 = arith.constant 0.000000e+00 : f32
    %348 = vector.broadcast %cst_90 : f32 to vector<8x10xf32>
    %c0_91 = arith.constant 0 : index
    %c0_92 = arith.constant 0 : index
    %349 = vector.load %arg12[%c0_91, %c0_92] : memref<8x10xf32, #tpu.memory_space<vmem>>, vector<8x10xf32>
    tpu.vector_store %arg12[%c0_91, %c0_92], %348 {strides = array<i32>} : memref<8x10xf32, #tpu.memory_space<vmem>>, vector<8x10xf32>,
    return
  }
  func.func @transform_0(%arg0: i32) -> (i32, i32) {
    %c0_i32 = arith.constant 0 : i32
    %c0_i32_0 = arith.constant 0 : i32
    %c0_i32_1 = arith.constant 0 : i32
    return %c0_i32, %c0_i32_0 : i32, i32
  }
  func.func @transform_1(%arg0: i32) -> (i32, i32) {
    %c0_i32 = arith.constant 0 : i32
    %c0_i32_0 = arith.constant 0 : i32
    %c0_i32_1 = arith.constant 0 : i32
    return %c0_i32, %c0_i32_0 : i32, i32
  }
  func.func @transform_2(%arg0: i32) -> (i32, i32) {
    %c0_i32 = arith.constant 0 : i32
    %c0_i32_0 = arith.constant 0 : i32
    %c0_i32_1 = arith.constant 0 : i32
    return %c0_i32, %c0_i32_0 : i32, i32
  }
  func.func @transform_3(%arg0: i32) -> (i32, i32) {
    %c0_i32 = arith.constant 0 : i32
    %c0_i32_0 = arith.constant 0 : i32
    %c0_i32_1 = arith.constant 0 : i32
    return %c0_i32, %c0_i32_0 : i32, i32
  }
  func.func @transform_4(%arg0: i32) -> (i32, i32) {
    %c0_i32 = arith.constant 0 : i32
    %c0_i32_0 = arith.constant 0 : i32
    %c0_i32_1 = arith.constant 0 : i32
    return %c0_i32, %c0_i32_0 : i32, i32
  }
  func.func @transform_5(%arg0: i32) -> (i32, i32) {
    %c0_i32 = arith.constant 0 : i32
    %c0_i32_0 = arith.constant 0 : i32
    %c0_i32_1 = arith.constant 0 : i32
    return %c0_i32, %c0_i32_0 : i32, i32
  }
  func.func @transform_6(%arg0: i32) -> (i32, i32) {
    %c0_i32 = arith.constant 0 : i32
    %c0_i32_0 = arith.constant 0 : i32
    %c0_i32_1 = arith.constant 0 : i32
    return %c0_i32, %c0_i32_0 : i32, i32
  }
  func.func @transform_7(%arg0: i32) -> (i32, i32) {
    %c0_i32 = arith.constant 0 : i32
    %c0_i32_0 = arith.constant 0 : i32
    %c0_i32_1 = arith.constant 0 : i32
    return %c0_i32, %c0_i32_0 : i32, i32
  }
  func.func @transform_8(%arg0: i32) -> (i32, i32) {
    %c0_i32 = arith.constant 0 : i32
    %c0_i32_0 = arith.constant 0 : i32
    %c0_i32_1 = arith.constant 0 : i32
    return %c0_i32, %c0_i32_0 : i32, i32
  }
  func.func @transform_9(%arg0: i32) -> (i32, i32) {
    %c0_i32 = arith.constant 0 : i32
    %c0_i32_0 = arith.constant 0 : i32
    %c0_i32_1 = arith.constant 0 : i32
    return %c0_i32, %c0_i32_0 : i32, i32
  }
  func.func @transform_10(%arg0: i32) -> (i32, i32) {
    %c0_i32 = arith.constant 0 : i32
    %c0_i32_0 = arith.constant 0 : i32
    %c0_i32_1 = arith.constant 0 : i32
    return %c0_i32, %c0_i32_0 : i32, i32
  }
  func.func @transform_11(%arg0: i32) -> (i32, i32) {
    %c0_i32 = arith.constant 0 : i32
    %c0_i32_0 = arith.constant 0 : i32
    %c0_i32_1 = arith.constant 0 : i32
    return %c0_i32, %c0_i32_0 : i32, i32
  }
  func.func @transform_12(%arg0: i32) -> (i32, i32) {
    %c0_i32 = arith.constant 0 : i32
    %c0_i32_0 = arith.constant 0 : i32
    %c0_i32_1 = arith.constant 0 : i32
    return %c0_i32, %c0_i32_0 : i32, i32
  }
}

</mosaic_0001>

<bundles_post_ra>
// kernel: tpu_custom_call.1
= control target key start
LH: loop header
LB: loop body
LE: loop exit
PB: predicated region body
PF: predicated region fallthrough
CT: control target
= control target key end

     0   :  { %18 = vsyncpa [#allocation3], 0  ;;  %s4012_s0 = inlined_call_operand.vmem [shape: f32[8,1024], index: 0, kind: input, shape index: {}]   ;;  %s4013_s1 = inlined_call_operand.vmem [shape: f32[1024,32], index: 1, kind: input, shape index: {}]   ;;  %s4014_s2 = inlined_call_operand.vmem [shape: f32[1,32], index: 2, kind: input, shape index: {}]   ;;  %s4015_s3 = inlined_call_operand.vmem [shape: f32[32,128], index: 3, kind: input, shape index: {}]   ;;  %s4016_s4 = inlined_call_operand.vmem [shape: f32[32,128], index: 4, kind: input, shape index: {}]   ;;  %s4017_s5 = inlined_call_operand.vmem [shape: f32[1,128], index: 5, kind: input, shape index: {}]   ;;  %s4018_s6 = inlined_call_operand.vmem [shape: f32[32,128], index: 6, kind: input, shape index: {}]   ;;  %s4019_s7 = inlined_call_operand.vmem [shape: f32[32,128], index: 7, kind: input, shape index: {}]   ;;  %s4020_s8 = inlined_call_operand.vmem [shape: f32[1,128], index: 8, kind: input, shape index: {}]   ;;  %s4021_s9 = inlined_call_operand.vmem [shape: f32[32,10], index: 9, kind: input, shape index: {}]   ;;  %s4022_s10 = inlined_call_operand.vmem [shape: f32[1,10], index: 10, kind: input, shape index: {}]   ;;  %s4023_s11 = inlined_call_operand.hbm [shape: f32[8,10], index: 11, kind: output, shape index: {0}]   ;;  %s4024_s12 = inlined_call_operand.hbm [shape: f32[8,10], index: 12, kind: output, shape index: {1}]  }
   0x1   :  { %v81_v0 = vld [vmem:[%s4013_s1 + $0xf8] sm:$0xff]  ;;  %v80_v4 = vld [vmem:[%s4013_s1 + $0xf0] sm:$0xff]  ;;  %v79_v8 = vld [vmem:[%s4013_s1 + $0xe8] sm:$0xff] }
   0x2   :  { %v113_v1 = vld [vmem:[%s4013_s1 + $0x1f8] sm:$0xff]  ;;  %2508 = vmatprep.subr.mxu0 %v81_v0  ;;  %v112_v5 = vld [vmem:[%s4013_s1 + $0x1f0] sm:$0xff]  ;;  %v111_v9 = vld [vmem:[%s4013_s1 + $0x1e8] sm:$0xff] }
   0x3   :  { %v65_v2 = vld [vmem:[%s4013_s1 + $0x78] sm:$0xff]  ;;  %2543 = vmatprep.subr.mxu1 %v113_v1  ;;  %v64_v6 = vld [vmem:[%s4013_s1 + $0x70] sm:$0xff]  ;;  %v63_v10 = vld [vmem:[%s4013_s1 + $0x68] sm:$0xff] }
   0x4   :  { %v97_v3 = vld [vmem:[%s4013_s1 + $0x178] sm:$0xff]  ;;  %2509 = vmatpush3.msra.mxu0 %v65_v2  ;;  %v96_v7 = vld [vmem:[%s4013_s1 + $0x170] sm:$0xff]  ;;  %v95_v11 = vld [vmem:[%s4013_s1 + $0x168] sm:$0xff] }
   0x5   :  { %2544 = vmatpush3.msra.mxu1 %v97_v3  ;;  %2510 = vmatprep.subr.mxu0 %v80_v4  ;;  %v78_v12 = vld [vmem:[%s4013_s1 + $0xe0] sm:$0xff]  ;;  %v77_v16 = vld [vmem:[%s4013_s1 + $0xd8] sm:$0xff]  ;;  %v76_v20 = vld [vmem:[%s4013_s1 + $0xd0] sm:$0xff] }
   0x6   :  { %2545 = vmatprep.subr.mxu1 %v112_v5  ;;  %2511 = vmatpush3.msra.mxu0 %v64_v6  ;;  %v110_v13 = vld [vmem:[%s4013_s1 + $0x1e0] sm:$0xff]  ;;  %v109_v17 = vld [vmem:[%s4013_s1 + $0x1d8] sm:$0xff]  ;;  %v108_v21 = vld [vmem:[%s4013_s1 + $0x1d0] sm:$0xff] }
   0x7   :  { %2546 = vmatpush3.msra.mxu1 %v96_v7  ;;  %2512 = vmatprep.subr.mxu0 %v79_v8  ;;  %v62_v14 = vld [vmem:[%s4013_s1 + $0x60] sm:$0xff]  ;;  %v61_v18 = vld [vmem:[%s4013_s1 + $0x58] sm:$0xff]  ;;  %v60_v22 = vld [vmem:[%s4013_s1 + $0x50] sm:$0xff] }
   0x8   :  { %2547 = vmatprep.subr.mxu1 %v111_v9  ;;  %v94_v15 = vld [vmem:[%s4013_s1 + $0x160] sm:$0xff]  ;;  %2513 = vmatpush3.msra.mxu0 %v63_v10  ;;  %v93_v19 = vld [vmem:[%s4013_s1 + $0x158] sm:$0xff]  ;;  %v92_v23 = vld [vmem:[%s4013_s1 + $0x150] sm:$0xff] }
   0x9   :  { %2548 = vmatpush3.msra.mxu1 %v95_v11  ;;  %2514 = vmatprep.subr.mxu0 %v78_v12  ;;  %v75_v24 = vld [vmem:[%s4013_s1 + $0xc8] sm:$0xff]  ;;  %v74_v28 = vld [vmem:[%s4013_s1 + $0xc0] sm:$0xff]  ;;  %v73_v32 = vld [vmem:[%s4013_s1 + $0xb8] sm:$0xff] }
   0xa   :  { %2549 = vmatprep.subr.mxu1 %v110_v13  ;;  %2515 = vmatpush3.msra.mxu0 %v62_v14  ;;  %v107_v25 = vld [vmem:[%s4013_s1 + $0x1c8] sm:$0xff]  ;;  %v106_v29 = vld [vmem:[%s4013_s1 + $0x1c0] sm:$0xff]  ;;  %v105_v33 = vld [vmem:[%s4013_s1 + $0x1b8] sm:$0xff] }
   0xb   :  { %2550 = vmatpush3.msra.mxu1 %v94_v15  ;;  %2516 = vmatprep.subr.mxu0 %v77_v16  ;;  %v59_v26 = vld [vmem:[%s4013_s1 + $0x48] sm:$0xff]  ;;  %v58_v30 = vld [vmem:[%s4013_s1 + $0x40] sm:$0xff]  ;;  %v57_v34 = vld [vmem:[%s4013_s1 + $0x38] sm:$0xff] }
   0xc   :  { %2551 = vmatprep.subr.mxu1 %v109_v17  ;;  %2517 = vmatpush3.msra.mxu0 %v61_v18  ;;  %v91_v27 = vld [vmem:[%s4013_s1 + $0x148] sm:$0xff]  ;;  %v90_v31 = vld [vmem:[%s4013_s1 + $0x140] sm:$0xff]  ;;  %v89_v35 = vld [vmem:[%s4013_s1 + $0x138] sm:$0xff] }
   0xd   :  { %2552 = vmatpush3.msra.mxu1 %v93_v19  ;;  %2518 = vmatprep.subr.mxu0 %v76_v20  ;;  %v72_v36 = vld [vmem:[%s4013_s1 + $0xb0] sm:$0xff]  ;;  %v71_v40 = vld [vmem:[%s4013_s1 + $0xa8] sm:$0xff]  ;;  %v70_v44 = vld [vmem:[%s4013_s1 + $0xa0] sm:$0xff] }
   0xe   :  { %2553 = vmatprep.subr.mxu1 %v108_v21  ;;  %2519 = vmatpush3.msra.mxu0 %v60_v22  ;;  %v104_v37 = vld [vmem:[%s4013_s1 + $0x1b0] sm:$0xff]  ;;  %v103_v41 = vld [vmem:[%s4013_s1 + $0x1a8] sm:$0xff]  ;;  %v102_v45 = vld [vmem:[%s4013_s1 + $0x1a0] sm:$0xff] }
   0xf   :  { %2554 = vmatpush3.msra.mxu1 %v92_v23  ;;  %2520 = vmatprep.subr.mxu0 %v75_v24  ;;  %v56_v38 = vld [vmem:[%s4013_s1 + $0x30] sm:$0xff]  ;;  %v55_v42 = vld [vmem:[%s4013_s1 + $0x28] sm:$0xff]  ;;  %v54_v46 = vld [vmem:[%s4013_s1 + $0x20] sm:$0xff] }
  0x10   :  { %2555 = vmatprep.subr.mxu1 %v107_v25  ;;  %2521 = vmatpush3.msra.mxu0 %v59_v26  ;;  %v88_v39 = vld [vmem:[%s4013_s1 + $0x130] sm:$0xff]  ;;  %v87_v43 = vld [vmem:[%s4013_s1 + $0x128] sm:$0xff]  ;;  %v86_v47 = vld [vmem:[%s4013_s1 + $0x120] sm:$0xff] }
  0x11   :  { %2556 = vmatpush3.msra.mxu1 %v91_v27  ;;  %2522 = vmatprep.subr.mxu0 %v74_v28  ;;  %v69_v48 = vld [vmem:[%s4013_s1 + $0x98] sm:$0xff]  ;;  %v68_v52 = vld [vmem:[%s4013_s1 + $0x90] sm:$0xff]  ;;  %v67_v56 = vld [vmem:[%s4013_s1 + $0x88] sm:$0xff] }
  0x12   :  { %2557 = vmatprep.subr.mxu1 %v106_v29  ;;  %2523 = vmatpush3.msra.mxu0 %v58_v30  ;;  %v101_v49 = vld [vmem:[%s4013_s1 + $0x198] sm:$0xff]  ;;  %v100_v53 = vld [vmem:[%s4013_s1 + $0x190] sm:$0xff]  ;;  %v99_v57 = vld [vmem:[%s4013_s1 + $0x188] sm:$0xff] }
  0x13   :  { %2558 = vmatpush3.msra.mxu1 %v90_v31  ;;  %2524 = vmatprep.subr.mxu0 %v73_v32  ;;  %v53_v50 = vld [vmem:[%s4013_s1 + $0x18] sm:$0xff]  ;;  %v52_v54 = vld [vmem:[%s4013_s1 + $0x10] sm:$0xff]  ;;  %v51_v58 = vld [vmem:[%s4013_s1 + $0x8] sm:$0xff] }
  0x14   :  { %2559 = vmatprep.subr.mxu1 %v105_v33  ;;  %2525 = vmatpush3.msra.mxu0 %v57_v34  ;;  %v85_v51 = vld [vmem:[%s4013_s1 + $0x118] sm:$0xff]  ;;  %v84_v55 = vld [vmem:[%s4013_s1 + $0x110] sm:$0xff]  ;;  %v83_v59 = vld [vmem:[%s4013_s1 + $0x108] sm:$0xff] }
  0x15   :  { %2560 = vmatpush3.msra.mxu1 %v89_v35  ;;  %2526 = vmatprep.subr.mxu0 %v72_v36  ;;  %v66_v60 = vld [vmem:[%s4013_s1 + $0x80] sm:$0xff]  ;;  %v43_v63 = vld [vmem:[%s4012_s0 + $0x8] sm:$0xff]  ;;  %v45_v2 = vld [vmem:[%s4012_s0 + $0x18] sm:$0xff] }
  0x16   :  { %2561 = vmatprep.subr.mxu1 %v104_v37  ;;  %2527 = vmatpush3.msra.mxu0 %v56_v38  ;;  %v98_v61 = vld [vmem:[%s4013_s1 + $0x180] sm:$0xff]  ;;  %v145_v3 = vld [vmem:[%s4013_s1 + $0x2f8] sm:$0xff]  ;;  %v44_v5 = vld [vmem:[%s4012_s0 + $0x10] sm:$0xff] }
  0x17   :  { %2562 = vmatpush3.msra.mxu1 %v88_v39  ;;  %2528 = vmatprep.subr.mxu0 %v71_v40  ;;  %v50_v62 = vld [vmem:[%s4013_s1] sm:$0xff]  ;;  %v177_v4 = vld [vmem:[%s4013_s1 + $0x3f8] sm:$0xff]  ;;  %v144_v8 = vld [vmem:[%s4013_s1 + $0x2f0] sm:$0xff] }
  0x18   :  { %2563 = vmatprep.subr.mxu1 %v103_v41  ;;  %2529 = vmatpush3.msra.mxu0 %v55_v42  ;;  %v82_v0 = vld [vmem:[%s4013_s1 + $0x100] sm:$0xff]  ;;  %v129_v6 = vld [vmem:[%s4013_s1 + $0x278] sm:$0xff]  ;;  %v176_v9 = vld [vmem:[%s4013_s1 + $0x3f0] sm:$0xff] }
  0x19   :  { %2564 = vmatpush3.msra.mxu1 %v87_v43  ;;  %2530 = vmatprep.subr.mxu0 %v70_v44  ;;  %v42_v1 = vld [vmem:[%s4012_s0] sm:$0xff]  ;;  %v161_v7 = vld [vmem:[%s4013_s1 + $0x378] sm:$0xff]  ;;  %v128_v10 = vld [vmem:[%s4013_s1 + $0x270] sm:$0xff] }
  0x1a   :  { %2565 = vmatprep.subr.mxu1 %v102_v45  ;;  %2531 = vmatpush3.msra.mxu0 %v54_v46  ;;  %v160_v11 = vld [vmem:[%s4013_s1 + $0x370] sm:$0xff]  ;;  %v143_v12 = vld [vmem:[%s4013_s1 + $0x2e8] sm:$0xff]  ;;  %v142_v16 = vld [vmem:[%s4013_s1 + $0x2e0] sm:$0xff] }
  0x1b   :  { %2566 = vmatpush3.msra.mxu1 %v86_v47  ;;  %2532 = vmatprep.subr.mxu0 %v69_v48  ;;  %v175_v13 = vld [vmem:[%s4013_s1 + $0x3e8] sm:$0xff]  ;;  %v174_v17 = vld [vmem:[%s4013_s1 + $0x3e0] sm:$0xff]  ;;  %v141_v20 = vld [vmem:[%s4013_s1 + $0x2d8] sm:$0xff] }
  0x1c   :  { %2567 = vmatprep.subr.mxu1 %v101_v49  ;;  %2533 = vmatpush3.msra.mxu0 %v53_v50  ;;  %v127_v14 = vld [vmem:[%s4013_s1 + $0x268] sm:$0xff]  ;;  %v126_v18 = vld [vmem:[%s4013_s1 + $0x260] sm:$0xff]  ;;  %v173_v21 = vld [vmem:[%s4013_s1 + $0x3d8] sm:$0xff] }
  0x1d   :  { %2568 = vmatpush3.msra.mxu1 %v85_v51  ;;  %2534 = vmatprep.subr.mxu0 %v68_v52  ;;  %v159_v15 = vld [vmem:[%s4013_s1 + $0x368] sm:$0xff]  ;;  %v158_v19 = vld [vmem:[%s4013_s1 + $0x360] sm:$0xff]  ;;  %v125_v22 = vld [vmem:[%s4013_s1 + $0x258] sm:$0xff] }
  0x1e   :  { %2569 = vmatprep.subr.mxu1 %v100_v53  ;;  %2535 = vmatpush3.msra.mxu0 %v52_v54  ;;  %v157_v23 = vld [vmem:[%s4013_s1 + $0x358] sm:$0xff]  ;;  %v140_v24 = vld [vmem:[%s4013_s1 + $0x2d0] sm:$0xff]  ;;  %v139_v28 = vld [vmem:[%s4013_s1 + $0x2c8] sm:$0xff] }
  0x1f   :  { %2570 = vmatpush3.msra.mxu1 %v84_v55  ;;  %2536 = vmatprep.subr.mxu0 %v67_v56  ;;  %v172_v25 = vld [vmem:[%s4013_s1 + $0x3d0] sm:$0xff]  ;;  %v171_v29 = vld [vmem:[%s4013_s1 + $0x3c8] sm:$0xff] }
  0x20   :  { %2571 = vmatprep.subr.mxu1 %v99_v57  ;;  %2537 = vmatpush3.msra.mxu0 %v51_v58  ;;  %v124_v26 = vld [vmem:[%s4013_s1 + $0x250] sm:$0xff]  ;;  %v123_v30 = vld [vmem:[%s4013_s1 + $0x248] sm:$0xff] }
  0x21   :  { %2572 = vmatpush3.msra.mxu1 %v83_v59  ;;  %2538 = vmatprep.subr.mxu0 %v66_v60  ;;  %v156_v27 = vld [vmem:[%s4013_s1 + $0x350] sm:$0xff]  ;;  %v155_v31 = vld [vmem:[%s4013_s1 + $0x348] sm:$0xff] }
  0x22   :  { %2573 = vmatprep.subr.mxu1 %v98_v61  ;;  %2539 = vmatpush3.msra.mxu0 %v50_v62 }
  0x23   :  { %249 = vmatprep.mubr.f32.mxu0 %v43_v63  ;;  %2574 = vmatpush3.msra.mxu1 %v82_v0 }
  0x24   :  { %250 = vmatmul.mubr.f32.vlgmr.msra.gmra.mxu0 %v42_v1  ;;  %319 = vmatprep.mubr.f32.mxu1 %v45_v2 }
  0x25   :  { %2578 = vmatprep.subr.mxu0 %v145_v3  ;;  %2613 = vmatprep.subr.mxu1 %v177_v4 }
  0x26   :  { %320 = vmatmul.mubr.f32.vlgmr.msra.gmra.mxu1 %v44_v5  ;;  %2579 = vmatpush3.msra.mxu0 %v129_v6 }
  0x27   :  { %2614 = vmatpush3.msra.mxu1 %v161_v7  ;;  %2580 = vmatprep.subr.mxu0 %v144_v8 }
  0x28   :  { %2615 = vmatprep.subr.mxu1 %v176_v9  ;;  %2581 = vmatpush3.msra.mxu0 %v128_v10 }
  0x29   :  { %2616 = vmatpush3.msra.mxu1 %v160_v11  ;;  %2582 = vmatprep.subr.mxu0 %v143_v12 }
  0x2a   :  { %2617 = vmatprep.subr.mxu1 %v175_v13  ;;  %2583 = vmatpush3.msra.mxu0 %v127_v14 }
  0x2b   :  { %2618 = vmatpush3.msra.mxu1 %v159_v15  ;;  %2584 = vmatprep.subr.mxu0 %v142_v16 }
  0x2c   :  { %2619 = vmatprep.subr.mxu1 %v174_v17  ;;  %2585 = vmatpush3.msra.mxu0 %v126_v18 }
  0x2d   :  { %2620 = vmatpush3.msra.mxu1 %v158_v19  ;;  %2586 = vmatprep.subr.mxu0 %v141_v20 }
  0x2e   :  { %2621 = vmatprep.subr.mxu1 %v173_v21  ;;  %2587 = vmatpush3.msra.mxu0 %v125_v22 }
  0x2f   :  { %2622 = vmatpush3.msra.mxu1 %v157_v23  ;;  %2588 = vmatprep.subr.mxu0 %v140_v24 }
  0x30   :  { %2623 = vmatprep.subr.mxu1 %v172_v25 }
  0x31   :  { %19 = vsyncpa [#allocation5], 0  ;;  %2589 = vmatpush3.msra.mxu0 %v124_v26  ;;  %2624 = vmatpush3.msra.mxu1 %v156_v27  ;;  %v138_v32 = vld [vmem:[%s4013_s1 + $0x2c0] sm:$0xff]  ;;  %v137_v36 = vld [vmem:[%s4013_s1 + $0x2b8] sm:$0xff]  ;;  %v3130_v8 = vmov 0.0   ;;  %vm3131_vm0 = vmmov 0  }
  0x32   :  { %v170_v33 = vld [vmem:[%s4013_s1 + $0x3c0] sm:$0xff]  ;;  %2590 = vmatprep.subr.mxu0 %v139_v28  ;;  %2625 = vmatprep.subr.mxu1 %v171_v29  ;;  %v169_v37 = vld [vmem:[%s4013_s1 + $0x3b8] sm:$0xff]  ;;  %v136_v40 = vld [vmem:[%s4013_s1 + $0x2b0] sm:$0xff]  ;;  %vm476_vm1 = vcmask 261120   ;;  %s3132_s20 = smov 32   ;;  %vm1400_vm2 = vcmask 1040384  }
  0x33   :  { %v122_v34 = vld [vmem:[%s4013_s1 + $0x240] sm:$0xff]  ;;  %2591 = vmatpush3.msra.mxu0 %v123_v30  ;;  %2626 = vmatpush3.msra.mxu1 %v155_v31  ;;  %v121_v38 = vld [vmem:[%s4013_s1 + $0x238] sm:$0xff]  ;;  %v168_v41 = vld [vmem:[%s4013_s1 + $0x3b0] sm:$0xff]  ;;  %vm1402_vm3 = vcmask 1041408   ;;  %vm1404_vm4 = vcmask 1042432   ;;  %vm1406_vm5 = vcmask 1043456  }
  0x34   :  { %v154_v35 = vld [vmem:[%s4013_s1 + $0x340] sm:$0xff]  ;;  %2592 = vmatprep.subr.mxu0 %v138_v32  ;;  %2627 = vmatprep.subr.mxu1 %v170_v33  ;;  %v153_v39 = vld [vmem:[%s4013_s1 + $0x338] sm:$0xff]  ;;  %v120_v42 = vld [vmem:[%s4013_s1 + $0x230] sm:$0xff]  ;;  %vm1408_vm6 = vcmask 1044480   ;;  %vm1410_vm7 = vcmask 1045504   ;;  %vm1412_vm8 = vcmask 1046528  }
  0x35   :  { %2593 = vmatpush3.msra.mxu0 %v122_v34  ;;  %2628 = vmatpush3.msra.mxu1 %v154_v35  ;;  %v152_v43 = vld [vmem:[%s4013_s1 + $0x330] sm:$0xff]  ;;  %v135_v44 = vld [vmem:[%s4013_s1 + $0x2a8] sm:$0xff]  ;;  %v134_v48 = vld [vmem:[%s4013_s1 + $0x2a0] sm:$0xff]  ;;  %vm2440_vm9 = vcmask 80896   ;;  %s3134_s22 = smov [#allocation2]  }
  0x36   :  { %2594 = vmatprep.subr.mxu0 %v137_v36  ;;  %2629 = vmatprep.subr.mxu1 %v169_v37  ;;  %v167_v45 = vld [vmem:[%s4013_s1 + $0x3a8] sm:$0xff]  ;;  %v166_v49 = vld [vmem:[%s4013_s1 + $0x3a0] sm:$0xff]  ;;  %v133_v52 = vld [vmem:[%s4013_s1 + $0x298] sm:$0xff]  ;;  %2442 = vst.msk [vmem:[#allocation2] sm:$0xff] %vm2440_vm9, %v3130_v8 }
  0x37   :  { %2595 = vmatpush3.msra.mxu0 %v121_v38  ;;  %2630 = vmatpush3.msra.mxu1 %v153_v39  ;;  %v119_v46 = vld [vmem:[%s4013_s1 + $0x228] sm:$0xff]  ;;  %v118_v50 = vld [vmem:[%s4013_s1 + $0x220] sm:$0xff]  ;;  %v165_v53 = vld [vmem:[%s4013_s1 + $0x398] sm:$0xff] }
  0x38   :  { %2596 = vmatprep.subr.mxu0 %v136_v40  ;;  %2631 = vmatprep.subr.mxu1 %v168_v41  ;;  %v151_v47 = vld [vmem:[%s4013_s1 + $0x328] sm:$0xff]  ;;  %v150_v51 = vld [vmem:[%s4013_s1 + $0x320] sm:$0xff]  ;;  %v117_v54 = vld [vmem:[%s4013_s1 + $0x218] sm:$0xff] }
  0x39   :  { %2597 = vmatpush3.msra.mxu0 %v120_v42  ;;  %2632 = vmatpush3.msra.mxu1 %v152_v43  ;;  %v149_v55 = vld [vmem:[%s4013_s1 + $0x318] sm:$0xff]  ;;  %v132_v56 = vld [vmem:[%s4013_s1 + $0x290] sm:$0xff]  ;;  %v131_v60 = vld [vmem:[%s4013_s1 + $0x288] sm:$0xff] }
  0x3a   :  { %2598 = vmatprep.subr.mxu0 %v135_v44  ;;  %2633 = vmatprep.subr.mxu1 %v167_v45  ;;  %v164_v57 = vld [vmem:[%s4013_s1 + $0x390] sm:$0xff]  ;;  %v163_v61 = vld [vmem:[%s4013_s1 + $0x388] sm:$0xff]  ;;  %v130_v0 = vld [vmem:[%s4013_s1 + $0x280] sm:$0xff] }
  0x3b   :  { %2599 = vmatpush3.msra.mxu0 %v119_v46  ;;  %2634 = vmatpush3.msra.mxu1 %v151_v47  ;;  %v116_v58 = vld [vmem:[%s4013_s1 + $0x210] sm:$0xff]  ;;  %v115_v62 = vld [vmem:[%s4013_s1 + $0x208] sm:$0xff]  ;;  %v162_v1 = vld [vmem:[%s4013_s1 + $0x380] sm:$0xff] }
  0x3c   :  { %2600 = vmatprep.subr.mxu0 %v134_v48  ;;  %2635 = vmatprep.subr.mxu1 %v166_v49  ;;  %v148_v59 = vld [vmem:[%s4013_s1 + $0x310] sm:$0xff]  ;;  %v147_v63 = vld [vmem:[%s4013_s1 + $0x308] sm:$0xff]  ;;  %v114_v2 = vld [vmem:[%s4013_s1 + $0x200] sm:$0xff] }
  0x3d   :  { %2601 = vmatpush3.msra.mxu0 %v118_v50  ;;  %2636 = vmatpush3.msra.mxu1 %v150_v51  ;;  %v47_v3 = vld [vmem:[%s4012_s0 + $0x28] sm:$0xff]  ;;  %v146_v4 = vld [vmem:[%s4013_s1 + $0x300] sm:$0xff]  ;;  %v49_v5 = vld [vmem:[%s4012_s0 + $0x38] sm:$0xff]  ;;  %s2449_s1 = sshll.u32 %s3134_s22, 4  ;;  %s2450_s1 = int_to_ptr.vmem [resolvable:$true] %s2449_s1 }
  0x3e   :  { %2602 = vmatprep.subr.mxu0 %v133_v52  ;;  %2637 = vmatprep.subr.mxu1 %v165_v53  ;;  %v46_v6 = vld [vmem:[%s4012_s0 + $0x20] sm:$0xff]  ;;  %v48_v7 = vld [vmem:[%s4012_s0 + $0x30] sm:$0xff]  ;;  %v468_v9 = vld [vmem:[%s4015_s3 + $0x18] sm:$0xff]  ;;  %p3091_p1 = scmp.lt.s32.totalorder %s2450_s1, %s2450_s1 }
  0x3f   :  { %2603 = vmatpush3.msra.mxu0 %v117_v54  ;;  %2638 = vmatpush3.msra.mxu1 %v149_v55  ;;  %v3617_v10 = vld [vmem:[%s4016_s4 + $0x18] sm:$0xff]  ;;  %v467_v11 = vld [vmem:[%s4015_s3 + $0x10] sm:$0xff]  ;;  %v466_v13 = vld [vmem:[%s4015_s3 + $0x8] sm:$0xff] }
  0x40   :  { %2604 = vmatprep.subr.mxu0 %v132_v56  ;;  %2639 = vmatprep.subr.mxu1 %v164_v57  ;;  %v3628_v12 = vld [vmem:[%s4016_s4 + $0x10] sm:$0xff]  ;;  %v3639_v14 = vld [vmem:[%s4016_s4 + $0x8] sm:$0xff]  ;;  %v465_v15 = vld [vmem:[%s4015_s3] sm:$0xff] }
  0x41   :  { %2605 = vmatpush3.msra.mxu0 %v116_v58  ;;  %2640 = vmatpush3.msra.mxu1 %v148_v59  ;;  %v3650_v16 = vld [vmem:[%s4016_s4] sm:$0xff] }
  0x42   :  { %2606 = vmatprep.subr.mxu0 %v131_v60  ;;  %2641 = vmatprep.subr.mxu1 %v163_v61  ;;  %v2471_v21 = vld [vmem:[%s4014_s2] ss:$0 sm:$0xff] }
  0x43   :  { %2607 = vmatpush3.msra.mxu0 %v115_v62  ;;  %2642 = vmatpush3.msra.mxu1 %v147_v63  ;;  %v2472_v36 = vld [vmem:[%s4017_s5] ss:$0 sm:$0xff]  ;;  %s3133_s5 = smov 64  }
  0x44   :  { %2608 = vmatprep.subr.mxu0 %v130_v0  ;;  %2643 = vmatprep.subr.mxu1 %v162_v1 }
  0x45   :  { %2609 = vmatpush3.msra.mxu0 %v114_v2  ;;  %389 = vmatprep.mubr.f32.mxu0 %v47_v3 }
  0x46   :  { %2644 = vmatpush3.msra.mxu1 %v146_v4  ;;  %459 = vmatprep.mubr.f32.mxu1 %v49_v5 }
  0x47   :  { %390 = vmatmul.mubr.f32.vlgmr.msra.gmra.mxu0 %v46_v6  ;;  %460 = vmatmul.mubr.f32.vlgmr.msra.gmra.mxu1 %v48_v7 }
  0x48   :  { %2743 = vmatprep.subr.mxu0 %v3130_v8  ;;  %2754 = vmatprep.subr.mxu1 %v3130_v8 }
  0x49   :  { %2744 = vmatpush3.msra.mxu0 %v468_v9  ;;  %2755 = vmatpush3.msra.mxu1 %v3617_v10 }
  0x4a   :  { %2745 = vmatprep.subr.mxu0 %v3130_v8  ;;  %2756 = vmatprep.subr.mxu1 %v3130_v8 }
  0x4b   :  { %2746 = vmatpush3.msra.mxu0 %v467_v11  ;;  %2757 = vmatpush3.msra.mxu1 %v3628_v12 }
  0x4c   :  { %2747 = vmatprep.subr.mxu0 %v3130_v8  ;;  %2758 = vmatprep.subr.mxu1 %v3130_v8 }
  0x4d   :  { %2748 = vmatpush3.msra.mxu0 %v466_v13  ;;  %2759 = vmatpush3.msra.mxu1 %v3639_v14 }
  0x4e   :  { %2749 = vmatprep.subr.mxu0 %v3130_v8  ;;  %2760 = vmatprep.subr.mxu1 %v3130_v8 }
  0x4f   :  { %2750 = vmatpush3.msra.mxu0 %v465_v15  ;;  %2751 = vmatprep.mubr.msk.f32.mxu0 %vm3131_vm0, %v3130_v8 }
  0x50   :  { %2761 = vmatpush3.msra.mxu1 %v3650_v16  ;;  %2762 = vmatprep.mubr.msk.f32.mxu1 %vm3131_vm0, %v3130_v8 }
  0x51   :  { %2763 = vmatmul.mubr.f32.vlgmr.msra.gmra.mxu1 %v3130_v8  ;;  %2765 = vmatprep.subr.mxu0 %v3130_v8 }
  0x52   :  { %2776 = vmatprep.subr.mxu1 %v3130_v8  ;;  %2784 = vmatprep.mubr.msk.f32.mxu1 %vm3131_vm0, %v3130_v8 }
  0x53   :  { %2777 = vmatpush3.msra.mxu1 %v3617_v10 }
  0x54   :  { %2778 = vmatprep.subr.mxu1 %v3130_v8 }
  0x55   :  { %2779 = vmatpush3.msra.mxu1 %v3628_v12 }
  0x56   :  { %2780 = vmatprep.subr.mxu1 %v3130_v8 }
  0x57   :  { %2781 = vmatpush3.msra.mxu1 %v3639_v14 }
  0x58   :  { %2782 = vmatprep.subr.mxu1 %v3130_v8 }
  0x59   :  { %2783 = vmatpush3.msra.mxu1 %v3650_v16 }
  0x5a   :  { %2798 = vmatprep.subr.mxu1 %v3130_v8 }
  0xe4   :  { %v2540_v17 = vpop.f32.mrf.mxu0 }
  0xe6   :  { %v2575_v18 = vpop.f32.mrf.mxu1  ;;  %v2541_v19 = vpop.f32.mrf.mxu0 }
  0xe7   :  { %v2542_v20 = vadd.f32 %v2541_v19, %v2540_v17 }
  0xe8   :  { %v2576_v22 = vpop.f32.mrf.mxu1 }
  0xe9   :  { %v252_v23 = vadd.f32 %v2542_v20, %v2471_v21  ;;  %v2577_v24 = vadd.f32 %v2576_v22, %v2575_v18 }
  0xeb   :  { %v322_v29 = vadd.f32 %v2577_v24, %v252_v23 }
 0x107   :  { %v2610_v25 = vpop.f32.mrf.mxu0  ;;  %v2645_v26 = vpop.f32.mrf.mxu1 }
 0x109   :  { %v2611_v27 = vpop.f32.mrf.mxu0  ;;  %v2646_v28 = vpop.f32.mrf.mxu1 }
 0x10a   :  { %v2612_v30 = vadd.f32 %v2611_v27, %v2610_v25  ;;  %v2647_v32 = vadd.f32 %v2646_v28, %v2645_v26 }
 0x10c   :  { %v392_v31 = vadd.f32 %v2612_v30, %v322_v29 }
 0x10e   :  { %v462_v33 = vadd.f32 %v2647_v32, %v392_v31 }
 0x110   :  { %2752 = vmatmul.mubr.msk.f32.vlgmr.msra.gmra.mxu0 %vm476_vm1, %v462_v33 }
 0x111   :  { %2766 = vmatpush3.msra.mxu0 %v3617_v10  ;;  %2773 = vmatprep.mubr.msk.f32.mxu0 %vm3131_vm0, %v3130_v8  ;;  %v623_v34 = vpop.f32.mrf.mxu1 }
 0x112   :  { %2767 = vmatprep.subr.mxu0 %v3130_v8 }
 0x113   :  { %2768 = vmatpush3.msra.mxu0 %v3628_v12  ;;  %v2764_v35 = vpop.f32.mrf.mxu1 }
 0x114   :  { %2769 = vmatprep.subr.mxu0 %v3130_v8 }
 0x115   :  { %2770 = vmatpush3.msra.mxu0 %v3639_v14 }
 0x116   :  { %2771 = vmatprep.subr.mxu0 %v3130_v8 }
 0x117   :  { %2772 = vmatpush3.msra.mxu0 %v3650_v16 }
 0x118   :  { %2787 = vmatprep.subr.mxu0 %v3130_v8 }
 0x1d0   :  { %v546_v37 = vpop.f32.mrf.mxu0 }
 0x1d1   :  { %v3687_v38 = vadd.f32 %v2472_v36, %v546_v37 }
 0x1d2   :  { %v2753_v39 = vpop.f32.mrf.mxu0 }
 0x1d3   :  { %v627_v40 = vadd.f32 %v623_v34, %v3687_v38 }
 0x1d5   :  { %2958 = vtanh.f32 %v627_v40  ;;  %v2474_v42 = vmul.f32 -1.442695, %v627_v40 }
 0x1d7   :  { %2960 = vpow2.f32 %v2474_v42 }
 0x1e2   :  { %v2959_v41 = vpop.eup %2958 }
 0x1e3   :  { %637 = vrot.lane.b32.xlu0 %v2959_v41, %s3132_s20 }
 0x1e4   :  { %v2961_v43 = vpop.eup %2960 }
 0x1e5   :  { %v631_v44 = vadd.f32 1.0, %v2961_v43 }
 0x1e7   :  { %2962 = vrcp.f32 %v631_v44 }
 0x1f4   :  { %v2963_v45 = vpop.eup %2962 }
 0x1f5   :  { %v635_v48 = vmul.f32 0.0, %v2963_v45 }
 0x255   :  { %v638_v46 = vpop.permute.xlu0 %637 }
 0x256   :  { %v640_v47 = vmul.f32 %v2963_v45, %v638_v46 }
 0x258   :  { %642 = vrot.lane.b32.xlu0 %v640_v47, %s3132_s20 }
 0x2ca   :  { %v643_v49 = vpop.permute.xlu0 %642 }
 0x2cb   :  { %v645_v50 = vadd.f32 %v643_v49, %v635_v48 }
 0x2cd   :  { %2964 = vtanh.f32 %v645_v50  ;;  %v739_v2 = vrot.slane %v645_v50, 7 }
 0x2da   :  { %v2965_v51 = vpop.eup %2964 }
 0x2db   :  { %648 = vrot.lane.b32.xlu1 %v2965_v51, %s3132_s20 }
 0x34d   :  { %v649_v52 = vpop.permute.xlu1 %648 }
 0x34e   :  { %v3693_v53 = vmul.f32 %v2963_v45, %v649_v52 }
 0x350   :  { %653 = vrot.lane.b32.xlu1 %v3693_v53, %s3133_s5 }
 0x3c2   :  { %v654_v54 = vpop.permute.xlu1 %653 }
 0x3c3   :  { %2774 = vmatmul.mubr.msk.f32.vlgmr.msra.gmra.mxu0 %vm476_vm1, %v654_v54 }
 0x3c4   :  { %2788 = vmatpush3.msra.mxu0 %v3617_v10  ;;  %2795 = vmatprep.mubr.msk.f32.mxu0 %vm3131_vm0, %v3130_v8 }
 0x3c5   :  { %2789 = vmatprep.subr.mxu0 %v3130_v8 }
 0x3c6   :  { %2790 = vmatpush3.msra.mxu0 %v3628_v12 }
 0x3c7   :  { %2791 = vmatprep.subr.mxu0 %v3130_v8 }
 0x3c8   :  { %2792 = vmatpush3.msra.mxu0 %v3639_v14 }
 0x3c9   :  { %2793 = vmatprep.subr.mxu0 %v3130_v8 }
 0x3ca   :  { %2794 = vmatpush3.msra.mxu0 %v3650_v16 }
 0x3cb   :  { %2809 = vmatprep.subr.mxu0 %v3130_v8 }
 0x483   :  { %v723_v55 = vpop.f32.mrf.mxu0 }
 0x484   :  { %v728_v56 = vrot.slane %v723_v55, 7 }
 0x485   :  { %v2775_v57 = vpop.f32.mrf.mxu0 }
 0x486   :  { %v730_v58 = vadd.f32 %v728_v56, %v3687_v38 }
 0x488   :  { %2966 = vtanh.f32 %v730_v58  ;;  %v2476_v60 = vmul.f32 -1.442695, %v730_v58 }
 0x48a   :  { %2968 = vpow2.f32 %v2476_v60 }
 0x495   :  { %v2967_v59 = vpop.eup %2966 }
 0x496   :  { %743 = vrot.lane.b32.xlu0 %v2967_v59, %s3132_s20 }
 0x497   :  { %v2969_v61 = vpop.eup %2968 }
 0x498   :  { %v734_v62 = vadd.f32 1.0, %v2969_v61 }
 0x49a   :  { %2970 = vrcp.f32 %v734_v62 }
 0x4a7   :  { %v2971_v63 = vpop.eup %2970 }
 0x4a8   :  { %v741_v3 = vmul.f32 %v2971_v63, %v739_v2 }
 0x508   :  { %v744_v0 = vpop.permute.xlu0 %743 }
 0x509   :  { %v746_v1 = vmul.f32 %v2971_v63, %v744_v0 }
 0x50b   :  { %748 = vrot.lane.b32.xlu1 %v746_v1, %s3132_s20 }
 0x57d   :  { %v749_v4 = vpop.permute.xlu1 %748 }
 0x57e   :  { %v751_v5 = vadd.f32 %v749_v4, %v741_v3 }
 0x580   :  { %2972 = vtanh.f32 %v751_v5  ;;  %v846_v27 = vrot.slane %v751_v5, 7 }
 0x58d   :  { %v2973_v6 = vpop.eup %2972 }
 0x58e   :  { %754 = vrot.lane.b32.xlu0 %v2973_v6, %s3132_s20 }
 0x600   :  { %v755_v7 = vpop.permute.xlu0 %754 }
 0x601   :  { %v757_v9 = vmul.f32 %v2971_v63, %v755_v7 }
 0x603   :  { %v759_v11 = vrot.slane %v757_v9, 1  ;;  %v1401_v34 = vsel %vm1400_vm2, %v3693_v53, %v757_v9 }
 0x605   :  { %760 = vrot.lane.b32.xlu1 %v759_v11, %s3133_s5 }
 0x677   :  { %v761_v13 = vpop.permute.xlu1 %760 }
 0x678   :  { %2785 = vmatmul.mubr.msk.f32.vlgmr.msra.gmra.mxu1 %vm476_vm1, %v761_v13 }
 0x679   :  { %2799 = vmatpush3.msra.mxu1 %v3617_v10  ;;  %2806 = vmatprep.mubr.msk.f32.mxu1 %vm3131_vm0, %v3130_v8 }
 0x67a   :  { %2800 = vmatprep.subr.mxu1 %v3130_v8 }
 0x67b   :  { %2801 = vmatpush3.msra.mxu1 %v3628_v12 }
 0x67c   :  { %2802 = vmatprep.subr.mxu1 %v3130_v8 }
 0x67d   :  { %2803 = vmatpush3.msra.mxu1 %v3639_v14 }
 0x67e   :  { %2804 = vmatprep.subr.mxu1 %v3130_v8 }
 0x67f   :  { %2805 = vmatpush3.msra.mxu1 %v3650_v16 }
 0x680   :  { %2820 = vmatprep.subr.mxu1 %v3130_v8 }
 0x738   :  { %v830_v15 = vpop.f32.mrf.mxu1 }
 0x739   :  { %v835_v17 = vrot.slane %v830_v15, 6 }
 0x73a   :  { %v2786_v18 = vpop.f32.mrf.mxu1 }
 0x73b   :  { %v837_v19 = vadd.f32 %v835_v17, %v3687_v38 }
 0x73d   :  { %2974 = vtanh.f32 %v837_v19  ;;  %v2478_v21 = vmul.f32 -1.442695, %v837_v19 }
 0x73f   :  { %2976 = vpow2.f32 %v2478_v21 }
 0x74a   :  { %v2975_v20 = vpop.eup %2974 }
 0x74b   :  { %850 = vrot.lane.b32.xlu0 %v2975_v20, %s3132_s20 }
 0x74c   :  { %v2977_v22 = vpop.eup %2976 }
 0x74d   :  { %v841_v23 = vadd.f32 1.0, %v2977_v22 }
 0x74f   :  { %2978 = vrcp.f32 %v841_v23 }
 0x75c   :  { %v2979_v24 = vpop.eup %2978 }
 0x75d   :  { %v848_v28 = vmul.f32 %v2979_v24, %v846_v27 }
 0x7bd   :  { %v851_v25 = vpop.permute.xlu0 %850 }
 0x7be   :  { %v853_v26 = vmul.f32 %v2979_v24, %v851_v25 }
 0x7c0   :  { %855 = vrot.lane.b32.xlu1 %v853_v26, %s3132_s20 }
 0x832   :  { %v856_v29 = vpop.permute.xlu1 %855 }
 0x833   :  { %v858_v30 = vadd.f32 %v856_v29, %v848_v28 }
 0x835   :  { %2980 = vtanh.f32 %v858_v30  ;;  %v953_v50 = vrot.slane %v858_v30, 7 }
 0x842   :  { %v2981_v31 = vpop.eup %2980 }
 0x843   :  { %861 = vrot.lane.b32.xlu0 %v2981_v31, %s3132_s20 }
 0x8b5   :  { %v862_v32 = vpop.permute.xlu0 %861 }
 0x8b6   :  { %v864_v33 = vmul.f32 %v2979_v24, %v862_v32 }
 0x8b8   :  { %v866_v35 = vrot.slane %v864_v33, 2  ;;  %v1403_v36 = vsel %vm1402_vm3, %v1401_v34, %v864_v33 }
 0x8ba   :  { %867 = vrot.lane.b32.xlu1 %v866_v35, %s3133_s5 }
 0x92c   :  { %v868_v37 = vpop.permute.xlu1 %867 }
 0x92d   :  { %2796 = vmatmul.mubr.msk.f32.vlgmr.msra.gmra.mxu0 %vm476_vm1, %v868_v37 }
 0x92e   :  { %2810 = vmatpush3.msra.mxu0 %v3617_v10  ;;  %2817 = vmatprep.mubr.msk.f32.mxu0 %vm3131_vm0, %v3130_v8 }
 0x92f   :  { %2811 = vmatprep.subr.mxu0 %v3130_v8 }
 0x930   :  { %2812 = vmatpush3.msra.mxu0 %v3628_v12 }
 0x931   :  { %2813 = vmatprep.subr.mxu0 %v3130_v8 }
 0x932   :  { %2814 = vmatpush3.msra.mxu0 %v3639_v14 }
 0x933   :  { %2815 = vmatprep.subr.mxu0 %v3130_v8 }
 0x934   :  { %2816 = vmatpush3.msra.mxu0 %v3650_v16 }
 0x935   :  { %2831 = vmatprep.subr.mxu0 %v3130_v8 }
 0x9ed   :  { %v937_v39 = vpop.f32.mrf.mxu0 }
 0x9ee   :  { %v942_v40 = vrot.slane %v937_v39, 5 }
 0x9ef   :  { %v2797_v41 = vpop.f32.mrf.mxu0 }
 0x9f0   :  { %v944_v42 = vadd.f32 %v942_v40, %v3687_v38 }
 0x9f2   :  { %2982 = vtanh.f32 %v944_v42  ;;  %v2480_v44 = vmul.f32 -1.442695, %v944_v42 }
 0x9f4   :  { %2984 = vpow2.f32 %v2480_v44 }
 0x9ff   :  { %v2983_v43 = vpop.eup %2982 }
 0xa00   :  { %957 = vrot.lane.b32.xlu0 %v2983_v43, %s3132_s20 }
 0xa01   :  { %v2985_v45 = vpop.eup %2984 }
 0xa02   :  { %v948_v46 = vadd.f32 1.0, %v2985_v45 }
 0xa04   :  { %2986 = vrcp.f32 %v948_v46 }
 0xa11   :  { %v2987_v47 = vpop.eup %2986 }
 0xa12   :  { %v955_v51 = vmul.f32 %v2987_v47, %v953_v50 }
 0xa72   :  { %v958_v48 = vpop.permute.xlu0 %957 }
 0xa73   :  { %v960_v49 = vmul.f32 %v2987_v47, %v958_v48 }
 0xa75   :  { %962 = vrot.lane.b32.xlu1 %v960_v49, %s3132_s20 }
 0xae7   :  { %v963_v52 = vpop.permute.xlu1 %962 }
 0xae8   :  { %v965_v53 = vadd.f32 %v963_v52, %v955_v51 }
 0xaea   :  { %2988 = vtanh.f32 %v965_v53  ;;  %v1060_v7 = vrot.slane %v965_v53, 7 }
 0xaf7   :  { %v2989_v54 = vpop.eup %2988 }
 0xaf8   :  { %968 = vrot.lane.b32.xlu0 %v2989_v54, %s3132_s20 }
 0xb6a   :  { %v969_v55 = vpop.permute.xlu0 %968 }
 0xb6b   :  { %v971_v56 = vmul.f32 %v2987_v47, %v969_v55 }
 0xb6d   :  { %v973_v57 = vrot.slane %v971_v56, 3  ;;  %v1405_v58 = vsel %vm1404_vm4, %v1403_v36, %v971_v56 }
 0xb6f   :  { %974 = vrot.lane.b32.xlu1 %v973_v57, %s3133_s5 }
 0xbe1   :  { %v975_v59 = vpop.permute.xlu1 %974 }
 0xbe2   :  { %2807 = vmatmul.mubr.msk.f32.vlgmr.msra.gmra.mxu1 %vm476_vm1, %v975_v59 }
 0xbe3   :  { %2821 = vmatpush3.msra.mxu1 %v3617_v10  ;;  %2828 = vmatprep.mubr.msk.f32.mxu1 %vm3131_vm0, %v3130_v8 }
 0xbe4   :  { %2822 = vmatprep.subr.mxu1 %v3130_v8 }
 0xbe5   :  { %2823 = vmatpush3.msra.mxu1 %v3628_v12 }
 0xbe6   :  { %2824 = vmatprep.subr.mxu1 %v3130_v8 }
 0xbe7   :  { %2825 = vmatpush3.msra.mxu1 %v3639_v14 }
 0xbe8   :  { %2826 = vmatprep.subr.mxu1 %v3130_v8 }
 0xbe9   :  { %2827 = vmatpush3.msra.mxu1 %v3650_v16 }
 0xbea   :  { %2842 = vmatprep.subr.mxu1 %v3130_v8 }
 0xca2   :  { %v1044_v60 = vpop.f32.mrf.mxu1 }
 0xca3   :  { %v1049_v61 = vrot.slane %v1044_v60, 4 }
 0xca4   :  { %v2808_v62 = vpop.f32.mrf.mxu1 }
 0xca5   :  { %v1051_v63 = vadd.f32 %v1049_v61, %v3687_v38 }
 0xca7   :  { %2990 = vtanh.f32 %v1051_v63  ;;  %v2482_v1 = vmul.f32 -1.442695, %v1051_v63 }
 0xca9   :  { %2992 = vpow2.f32 %v2482_v1 }
 0xcb4   :  { %v2991_v0 = vpop.eup %2990 }
 0xcb5   :  { %1064 = vrot.lane.b32.xlu0 %v2991_v0, %s3132_s20 }
 0xcb6   :  { %v2993_v2 = vpop.eup %2992 }
 0xcb7   :  { %v1055_v3 = vadd.f32 1.0, %v2993_v2 }
 0xcb9   :  { %2994 = vrcp.f32 %v1055_v3 }
 0xcc6   :  { %v2995_v4 = vpop.eup %2994 }
 0xcc7   :  { %v1062_v9 = vmul.f32 %v2995_v4, %v1060_v7 }
 0xd27   :  { %v1065_v5 = vpop.permute.xlu0 %1064 }
 0xd28   :  { %v1067_v6 = vmul.f32 %v2995_v4, %v1065_v5 }
 0xd2a   :  { %1069 = vrot.lane.b32.xlu1 %v1067_v6, %s3132_s20 }
 0xd9c   :  { %v1070_v11 = vpop.permute.xlu1 %1069 }
 0xd9d   :  { %v1072_v13 = vadd.f32 %v1070_v11, %v1062_v9 }
 0xd9f   :  { %2996 = vtanh.f32 %v1072_v13 }
 0xdac   :  { %v2997_v15 = vpop.eup %2996 }
 0xdad   :  { %1075 = vrot.lane.b32.xlu0 %v2997_v15, %s3132_s20 }
 0xe1f   :  { %v1076_v17 = vpop.permute.xlu0 %1075 }
 0xe20   :  { %v1078_v18 = vmul.f32 %v2995_v4, %v1076_v17  ;;  %v3806_v17 = vld [vmem:[%s4019_s7 + $0x18] sm:$0xff] }
 0xe22   :  { %v1080_v19 = vrot.slane %v1078_v18, 4  ;;  %v1407_v20 = vsel %vm1406_vm5, %v1405_v58, %v1078_v18  ;;  %v1416_v18 = vld [vmem:[%s4018_s6 + $0x10] sm:$0xff] }
 0xe24   :  { %1081 = vrot.lane.b32.xlu1 %v1080_v19, %s3133_s5  ;;  %v3815_v19 = vld [vmem:[%s4019_s7 + $0x10] sm:$0xff] }
 0xe96   :  { %v1082_v21 = vpop.permute.xlu1 %1081 }
 0xe97   :  { %2818 = vmatmul.mubr.msk.f32.vlgmr.msra.gmra.mxu0 %vm476_vm1, %v1082_v21  ;;  %v3825_v21 = vld [vmem:[%s4019_s7 + $0x8] sm:$0xff] }
 0xe98   :  { %2832 = vmatpush3.msra.mxu0 %v3617_v10  ;;  %2839 = vmatprep.mubr.msk.f32.mxu0 %vm3131_vm0, %v3130_v8 }
 0xe99   :  { %2833 = vmatprep.subr.mxu0 %v3130_v8 }
 0xe9a   :  { %2834 = vmatpush3.msra.mxu0 %v3628_v12 }
 0xe9b   :  { %2835 = vmatprep.subr.mxu0 %v3130_v8 }
 0xe9c   :  { %2836 = vmatpush3.msra.mxu0 %v3639_v14 }
 0xe9d   :  { %2837 = vmatprep.subr.mxu0 %v3130_v8 }
 0xe9e   :  { %2838 = vmatpush3.msra.mxu0 %v3650_v16  ;;  %v1167_v16 = vrot.slane %v1072_v13, 7 }
 0xe9f   :  { %2853 = vmatprep.subr.mxu0 %v3130_v8 }
 0xf57   :  { %v1151_v22 = vpop.f32.mrf.mxu0 }
 0xf58   :  { %v1156_v23 = vrot.slane %v1151_v22, 3  ;;  %v1414_v22 = vld [vmem:[%s4018_s6] sm:$0xff] }
 0xf59   :  { %v2819_v10 = vpop.f32.mrf.mxu0 }
 0xf5a   :  { %v1158_v24 = vadd.f32 %v1156_v23, %v3687_v38  ;;  %v3836_v23 = vld [vmem:[%s4019_s7] sm:$0xff] }
 0xf5c   :  { %2998 = vtanh.f32 %v1158_v24  ;;  %v2484_v12 = vmul.f32 -1.442695, %v1158_v24 }
 0xf5e   :  { %3000 = vpow2.f32 %v2484_v12 }
 0xf69   :  { %v2999_v25 = vpop.eup %2998 }
 0xf6a   :  { %1171 = vrot.lane.b32.xlu0 %v2999_v25, %s3132_s20 }
 0xf6b   :  { %v3001_v26 = vpop.eup %3000 }
 0xf6c   :  { %v1162_v27 = vadd.f32 1.0, %v3001_v26 }
 0xf6e   :  { %3002 = vrcp.f32 %v1162_v27 }
 0xf7b   :  { %v3003_v14 = vpop.eup %3002 }
 0xf7c   :  { %v1169_v30 = vmul.f32 %v3003_v14, %v1167_v16 }
 0xfdc   :  { %v1172_v28 = vpop.permute.xlu0 %1171 }
 0xfdd   :  { %v1174_v29 = vmul.f32 %v3003_v14, %v1172_v28  ;;  %v2489_v28 = vld [vmem:[%s4020_s8] ss:$0 sm:$0xff] }
 0xfdf   :  { %1176 = vrot.lane.b32.xlu1 %v1174_v29, %s3132_s20 }
0x1051   :  { %v1177_v31 = vpop.permute.xlu1 %1176 }
0x1052   :  { %v1179_v32 = vadd.f32 %v1177_v31, %v1169_v30 }
0x1054   :  { %3004 = vtanh.f32 %v1179_v32  ;;  %v1274_v51 = vrot.slane %v1179_v32, 7 }
0x1061   :  { %v3005_v33 = vpop.eup %3004 }
0x1062   :  { %1182 = vrot.lane.b32.xlu0 %v3005_v33, %s3132_s20 }
0x10d4   :  { %v1183_v34 = vpop.permute.xlu0 %1182 }
0x10d5   :  { %v1185_v35 = vmul.f32 %v3003_v14, %v1183_v34 }
0x10d7   :  { %v1187_v36 = vrot.slane %v1185_v35, 5  ;;  %v1409_v37 = vsel %vm1408_vm6, %v1407_v20, %v1185_v35  ;;  %v1415_v20 = vld [vmem:[%s4018_s6 + $0x8] sm:$0xff] }
0x10d9   :  { %1188 = vrot.lane.b32.xlu1 %v1187_v36, %s3133_s5 }
0x114b   :  { %v1189_v39 = vpop.permute.xlu1 %1188 }
0x114c   :  { %2829 = vmatmul.mubr.msk.f32.vlgmr.msra.gmra.mxu1 %vm476_vm1, %v1189_v39 }
0x114d   :  { %2850 = vmatprep.mubr.msk.f32.mxu1 %vm3131_vm0, %v3130_v8 }
0x120c   :  { %v1258_v40 = vpop.f32.mrf.mxu1 }
0x120d   :  { %v1263_v41 = vrot.slane %v1258_v40, 2 }
0x120e   :  { %v2830_v42 = vpop.f32.mrf.mxu1 }
0x120f   :  { %v1265_v43 = vadd.f32 %v1263_v41, %v3687_v38 }
0x1211   :  { %3006 = vtanh.f32 %v1265_v43  ;;  %v2486_v45 = vmul.f32 -1.442695, %v1265_v43 }
0x1213   :  { %3008 = vpow2.f32 %v2486_v45 }
0x121e   :  { %v3007_v44 = vpop.eup %3006 }
0x121f   :  { %1278 = vrot.lane.b32.xlu0 %v3007_v44, %s3132_s20 }
0x1220   :  { %v3009_v46 = vpop.eup %3008 }
0x1221   :  { %v1269_v47 = vadd.f32 1.0, %v3009_v46 }
0x1223   :  { %3010 = vrcp.f32 %v1269_v47 }
0x1230   :  { %v3011_v48 = vpop.eup %3010 }
0x1231   :  { %v1276_v52 = vmul.f32 %v3011_v48, %v1274_v51 }
0x1291   :  { %v1279_v49 = vpop.permute.xlu0 %1278 }
0x1292   :  { %v1281_v50 = vmul.f32 %v3011_v48, %v1279_v49 }
0x1294   :  { %1283 = vrot.lane.b32.xlu1 %v1281_v50, %s3132_s20 }
0x1306   :  { %v1284_v53 = vpop.permute.xlu1 %1283 }
0x1307   :  { %v1286_v54 = vadd.f32 %v1284_v53, %v1276_v52 }
0x1309   :  { %3012 = vtanh.f32 %v1286_v54  ;;  %v1381_v9 = vrot.slane %v1286_v54, 7 }
0x1316   :  { %v3013_v55 = vpop.eup %3012 }
0x1317   :  { %1289 = vrot.lane.b32.xlu0 %v3013_v55, %s3132_s20 }
0x1389   :  { %v1290_v56 = vpop.permute.xlu0 %1289 }
0x138a   :  { %v1292_v57 = vmul.f32 %v3011_v48, %v1290_v56 }
0x138c   :  { %v1294_v58 = vrot.slane %v1292_v57, 6  ;;  %v3791_v59 = vsel %vm1410_vm7, %v1409_v37, %v1292_v57 }
0x138e   :  { %1295 = vrot.lane.b32.xlu1 %v1294_v58, %s3133_s5 }
0x1400   :  { %v1296_v60 = vpop.permute.xlu1 %1295 }
0x1401   :  { %2840 = vmatmul.mubr.msk.f32.vlgmr.msra.gmra.mxu0 %vm476_vm1, %v1296_v60 }
0x1402   :  { %2861 = vmatprep.mubr.msk.f32.mxu0 %vm3131_vm0, %v3130_v8  ;;  %2854 = vmatpush3.msra.mxu0 %v3806_v17 }
0x1403   :  { %2855 = vmatprep.subr.mxu0 %v3130_v8 }
0x1404   :  { %2856 = vmatpush3.msra.mxu0 %v3815_v19 }
0x1405   :  { %2857 = vmatprep.subr.mxu0 %v3130_v8 }
0x1406   :  { %2858 = vmatpush3.msra.mxu0 %v3825_v21 }
0x1407   :  { %2859 = vmatprep.subr.mxu0 %v3130_v8 }
0x1408   :  { %2860 = vmatpush3.msra.mxu0 %v3836_v23 }
0x1409   :  { %2862 = vmatmul.mubr.f32.vlgmr.msra.gmra.mxu0 %v3130_v8  ;;  %2875 = vmatprep.subr.mxu0 %v3130_v8 }
0x140a   :  { %2883 = vmatprep.mubr.msk.f32.mxu0 %vm3131_vm0, %v3130_v8  ;;  %2876 = vmatpush3.msra.mxu0 %v3806_v17 }
0x140b   :  { %2877 = vmatprep.subr.mxu0 %v3130_v8 }
0x140c   :  { %2878 = vmatpush3.msra.mxu0 %v3815_v19 }
0x140d   :  { %2879 = vmatprep.subr.mxu0 %v3130_v8 }
0x140e   :  { %2880 = vmatpush3.msra.mxu0 %v3825_v21 }
0x140f   :  { %2881 = vmatprep.subr.mxu0 %v3130_v8 }
0x1410   :  { %2882 = vmatpush3.msra.mxu0 %v3836_v23 }
0x1411   :  { %2897 = vmatprep.subr.mxu0 %v3130_v8 }
0x14c1   :  { %v1365_v61 = vpop.f32.mrf.mxu0 }
0x14c2   :  { %v1370_v62 = vrot.slane %v1365_v61, 1 }
0x14c3   :  { %v2841_v63 = vpop.f32.mrf.mxu0 }
0x14c4   :  { %v1372_v0 = vadd.f32 %v1370_v62, %v3687_v38  ;;  %v1417_v38 = vld [vmem:[%s4018_s6 + $0x18] sm:$0xff] }
0x14c5   :  { %2843 = vmatpush3.msra.mxu1 %v1417_v38 }
0x14c6   :  { %3014 = vtanh.f32 %v1372_v0  ;;  %v2488_v2 = vmul.f32 -1.442695, %v1372_v0  ;;  %2844 = vmatprep.subr.mxu1 %v3130_v8 }
0x14c7   :  { %2845 = vmatpush3.msra.mxu1 %v1416_v18 }
0x14c8   :  { %3016 = vpow2.f32 %v2488_v2  ;;  %2846 = vmatprep.subr.mxu1 %v3130_v8 }
0x14c9   :  { %2847 = vmatpush3.msra.mxu1 %v1415_v20  ;;  %v1570_v27 = vpop.f32.mrf.mxu0 }
0x14ca   :  { %2848 = vmatprep.subr.mxu1 %v3130_v8 }
0x14cb   :  { %2849 = vmatpush3.msra.mxu1 %v1414_v22  ;;  %v2863_v14 = vpop.f32.mrf.mxu0 }
0x14cc   :  { %2864 = vmatprep.subr.mxu1 %v3130_v8 }
0x14d3   :  { %v3015_v1 = vpop.eup %3014 }
0x14d4   :  { %1385 = vrot.lane.b32.xlu0 %v3015_v1, %s3132_s20 }
0x14d5   :  { %v3017_v3 = vpop.eup %3016 }
0x14d6   :  { %v1376_v4 = vadd.f32 1.0, %v3017_v3 }
0x14d8   :  { %3018 = vrcp.f32 %v1376_v4 }
0x14e5   :  { %v3019_v5 = vpop.eup %3018 }
0x14e6   :  { %v1383_v11 = vmul.f32 %v3019_v5, %v1381_v9 }
0x1546   :  { %v1386_v6 = vpop.permute.xlu0 %1385 }
0x1547   :  { %v1388_v7 = vmul.f32 %v3019_v5, %v1386_v6 }
0x1549   :  { %1390 = vrot.lane.b32.xlu1 %v1388_v7, %s3132_s20 }
0x15bb   :  { %v1391_v13 = vpop.permute.xlu1 %1390 }
0x15bc   :  { %v1393_v15 = vadd.f32 %v1391_v13, %v1383_v11 }
0x15be   :  { %3020 = vtanh.f32 %v1393_v15 }
0x15cb   :  { %v3021_v10 = vpop.eup %3020 }
0x15cc   :  { %1396 = vrot.lane.b32.xlu0 %v3021_v10, %s3132_s20 }
0x163e   :  { %v1397_v24 = vpop.permute.xlu0 %1396 }
0x163f   :  { %v1399_v25 = vmul.f32 %v3019_v5, %v1397_v24 }
0x1641   :  { %v1413_v12 = vsel %vm1412_vm8, %v3791_v59, %v1399_v25 }
0x1642   :  { %1426 = vrot.lane.b32.xlu1 %v1413_v12, %s3133_s5 }
0x16b4   :  { %v1427_v26 = vpop.permute.xlu1 %1426 }
0x16b5   :  { %2851 = vmatmul.mubr.msk.f32.vlgmr.msra.gmra.mxu1 %vm476_vm1, %v1427_v26 }
0x16b6   :  { %2865 = vmatpush3.msra.mxu1 %v3806_v17  ;;  %2872 = vmatprep.mubr.msk.f32.mxu1 %vm3131_vm0, %v3130_v8 }
0x16b7   :  { %2866 = vmatprep.subr.mxu1 %v3130_v8 }
0x16b8   :  { %2867 = vmatpush3.msra.mxu1 %v3815_v19 }
0x16b9   :  { %2868 = vmatprep.subr.mxu1 %v3130_v8 }
0x16ba   :  { %2869 = vmatpush3.msra.mxu1 %v3825_v21 }
0x16bb   :  { %2870 = vmatprep.subr.mxu1 %v3130_v8 }
0x16bc   :  { %2871 = vmatpush3.msra.mxu1 %v3836_v23 }
0x16bd   :  { %2886 = vmatprep.subr.mxu1 %v3130_v8 }
0x1775   :  { %v1496_v29 = vpop.f32.mrf.mxu1 }
0x1776   :  { %v3873_v16 = vadd.f32 %v2489_v28, %v1496_v29 }
0x1777   :  { %v2852_v30 = vpop.f32.mrf.mxu1 }
0x1778   :  { %v1574_v31 = vadd.f32 %v1570_v27, %v3873_v16 }
0x177a   :  { %3022 = vtanh.f32 %v1574_v31  ;;  %v2491_v33 = vmul.f32 -1.442695, %v1574_v31 }
0x177c   :  { %3024 = vpow2.f32 %v2491_v33 }
0x1787   :  { %v3023_v32 = vpop.eup %3022 }
0x1788   :  { %1584 = vrot.lane.b32.xlu0 %v3023_v32, %s3132_s20 }
0x1789   :  { %v3025_v34 = vpop.eup %3024 }
0x178a   :  { %v1578_v35 = vadd.f32 1.0, %v3025_v34 }
0x178c   :  { %3026 = vrcp.f32 %v1578_v35 }
0x1799   :  { %v3027_v36 = vpop.eup %3026 }
0x179a   :  { %v1582_v40 = vmul.f32 0.0, %v3027_v36 }
0x17fa   :  { %v1585_v37 = vpop.permute.xlu0 %1584 }
0x17fb   :  { %v1587_v39 = vmul.f32 %v3027_v36, %v1585_v37 }
0x17fd   :  { %1589 = vrot.lane.b32.xlu1 %v1587_v39, %s3132_s20 }
0x186f   :  { %v1590_v41 = vpop.permute.xlu1 %1589 }
0x1870   :  { %v1592_v42 = vadd.f32 %v1590_v41, %v1582_v40 }
0x1872   :  { %3028 = vtanh.f32 %v1592_v42  ;;  %v1686_v58 = vrot.slane %v1592_v42, 7 }
0x187f   :  { %v3029_v43 = vpop.eup %3028 }
0x1880   :  { %1595 = vrot.lane.b32.xlu0 %v3029_v43, %s3132_s20 }
0x18f2   :  { %v1596_v44 = vpop.permute.xlu0 %1595 }
0x18f3   :  { %v3879_v45 = vmul.f32 %v3027_v36, %v1596_v44 }
0x18f5   :  { %1600 = vrot.lane.b32.xlu1 %v3879_v45, %s3133_s5 }
0x1967   :  { %v1601_v46 = vpop.permute.xlu1 %1600 }
0x1968   :  { %2873 = vmatmul.mubr.msk.f32.vlgmr.msra.gmra.mxu1 %vm476_vm1, %v1601_v46 }
0x1969   :  { %2887 = vmatpush3.msra.mxu1 %v3806_v17  ;;  %2894 = vmatprep.mubr.msk.f32.mxu1 %vm3131_vm0, %v3130_v8 }
0x196a   :  { %2888 = vmatprep.subr.mxu1 %v3130_v8 }
0x196b   :  { %2889 = vmatpush3.msra.mxu1 %v3815_v19 }
0x196c   :  { %2890 = vmatprep.subr.mxu1 %v3130_v8 }
0x196d   :  { %2891 = vmatpush3.msra.mxu1 %v3825_v21 }
0x196e   :  { %2892 = vmatprep.subr.mxu1 %v3130_v8 }
0x196f   :  { %2893 = vmatpush3.msra.mxu1 %v3836_v23 }
0x1970   :  { %2908 = vmatprep.subr.mxu1 %v3130_v8 }
0x1a28   :  { %v1670_v47 = vpop.f32.mrf.mxu1 }
0x1a29   :  { %v1675_v48 = vrot.slane %v1670_v47, 7 }
0x1a2a   :  { %v2874_v49 = vpop.f32.mrf.mxu1 }
0x1a2b   :  { %v1677_v50 = vadd.f32 %v1675_v48, %v3873_v16 }
0x1a2d   :  { %3030 = vtanh.f32 %v1677_v50  ;;  %v2493_v52 = vmul.f32 -1.442695, %v1677_v50 }
0x1a2f   :  { %3032 = vpow2.f32 %v2493_v52 }
0x1a3a   :  { %v3031_v51 = vpop.eup %3030 }
0x1a3b   :  { %1690 = vrot.lane.b32.xlu0 %v3031_v51, %s3132_s20 }
0x1a3c   :  { %v3033_v53 = vpop.eup %3032 }
0x1a3d   :  { %v1681_v54 = vadd.f32 1.0, %v3033_v53 }
0x1a3f   :  { %3034 = vrcp.f32 %v1681_v54 }
0x1a4c   :  { %v3035_v55 = vpop.eup %3034 }
0x1a4d   :  { %v1688_v59 = vmul.f32 %v3035_v55, %v1686_v58 }
0x1aad   :  { %v1691_v56 = vpop.permute.xlu0 %1690 }
0x1aae   :  { %v1693_v57 = vmul.f32 %v3035_v55, %v1691_v56 }
0x1ab0   :  { %1695 = vrot.lane.b32.xlu1 %v1693_v57, %s3132_s20 }
0x1b22   :  { %v1696_v60 = vpop.permute.xlu1 %1695 }
0x1b23   :  { %v1698_v61 = vadd.f32 %v1696_v60, %v1688_v59 }
0x1b25   :  { %3036 = vtanh.f32 %v1698_v61  ;;  %v1793_v20 = vrot.slane %v1698_v61, 7 }
0x1b32   :  { %v3037_v62 = vpop.eup %3036 }
0x1b33   :  { %1701 = vrot.lane.b32.xlu0 %v3037_v62, %s3132_s20 }
0x1ba5   :  { %v1702_v63 = vpop.permute.xlu0 %1701 }
0x1ba6   :  { %v1704_v0 = vmul.f32 %v3035_v55, %v1702_v63 }
0x1ba8   :  { %v1706_v1 = vrot.slane %v1704_v0, 1  ;;  %v2347_v27 = vsel %vm1400_vm2, %v3879_v45, %v1704_v0 }
0x1baa   :  { %1707 = vrot.lane.b32.xlu1 %v1706_v1, %s3133_s5 }
0x1c1c   :  { %v1708_v2 = vpop.permute.xlu1 %1707 }
0x1c1d   :  { %2884 = vmatmul.mubr.msk.f32.vlgmr.msra.gmra.mxu0 %vm476_vm1, %v1708_v2 }
0x1c1e   :  { %2898 = vmatpush3.msra.mxu0 %v3806_v17  ;;  %2905 = vmatprep.mubr.msk.f32.mxu0 %vm3131_vm0, %v3130_v8 }
0x1c1f   :  { %2899 = vmatprep.subr.mxu0 %v3130_v8 }
0x1c20   :  { %2900 = vmatpush3.msra.mxu0 %v3815_v19 }
0x1c21   :  { %2901 = vmatprep.subr.mxu0 %v3130_v8 }
0x1c22   :  { %2902 = vmatpush3.msra.mxu0 %v3825_v21 }
0x1c23   :  { %2903 = vmatprep.subr.mxu0 %v3130_v8 }
0x1c24   :  { %2904 = vmatpush3.msra.mxu0 %v3836_v23 }
0x1c25   :  { %2919 = vmatprep.subr.mxu0 %v3130_v8 }
0x1cdd   :  { %v1777_v3 = vpop.f32.mrf.mxu0 }
0x1cde   :  { %v1782_v4 = vrot.slane %v1777_v3, 6 }
0x1cdf   :  { %v2885_v5 = vpop.f32.mrf.mxu0 }
0x1ce0   :  { %v1784_v6 = vadd.f32 %v1782_v4, %v3873_v16 }
0x1ce2   :  { %3038 = vtanh.f32 %v1784_v6  ;;  %v2495_v9 = vmul.f32 -1.442695, %v1784_v6 }
0x1ce4   :  { %3040 = vpow2.f32 %v2495_v9 }
0x1cef   :  { %v3039_v7 = vpop.eup %3038 }
0x1cf0   :  { %1797 = vrot.lane.b32.xlu0 %v3039_v7, %s3132_s20 }
0x1cf1   :  { %v3041_v11 = vpop.eup %3040 }
0x1cf2   :  { %v1788_v13 = vadd.f32 1.0, %v3041_v11 }
0x1cf4   :  { %3042 = vrcp.f32 %v1788_v13 }
0x1d01   :  { %v3043_v15 = vpop.eup %3042 }
0x1d02   :  { %v1795_v22 = vmul.f32 %v3043_v15, %v1793_v20 }
0x1d62   :  { %v1798_v38 = vpop.permute.xlu0 %1797 }
0x1d63   :  { %v1800_v18 = vmul.f32 %v3043_v15, %v1798_v38 }
0x1d65   :  { %1802 = vrot.lane.b32.xlu1 %v1800_v18, %s3132_s20 }
0x1dd7   :  { %v1803_v10 = vpop.permute.xlu1 %1802 }
0x1dd8   :  { %v1805_v24 = vadd.f32 %v1803_v10, %v1795_v22 }
0x1dda   :  { %3044 = vtanh.f32 %v1805_v24  ;;  %v1900_v42 = vrot.slane %v1805_v24, 7 }
0x1de7   :  { %v3045_v25 = vpop.eup %3044 }
0x1de8   :  { %1808 = vrot.lane.b32.xlu0 %v3045_v25, %s3132_s20 }
0x1e5a   :  { %v1809_v12 = vpop.permute.xlu0 %1808 }
0x1e5b   :  { %v1811_v26 = vmul.f32 %v3043_v15, %v1809_v12 }
0x1e5d   :  { %v1813_v14 = vrot.slane %v1811_v26, 2  ;;  %v2348_v28 = vsel %vm1402_vm3, %v2347_v27, %v1811_v26 }
0x1e5f   :  { %1814 = vrot.lane.b32.xlu1 %v1813_v14, %s3133_s5 }
0x1ed1   :  { %v1815_v29 = vpop.permute.xlu1 %1814 }
0x1ed2   :  { %2895 = vmatmul.mubr.msk.f32.vlgmr.msra.gmra.mxu1 %vm476_vm1, %v1815_v29 }
0x1ed3   :  { %2909 = vmatpush3.msra.mxu1 %v3806_v17  ;;  %2916 = vmatprep.mubr.msk.f32.mxu1 %vm3131_vm0, %v3130_v8 }
0x1ed4   :  { %2910 = vmatprep.subr.mxu1 %v3130_v8 }
0x1ed5   :  { %2911 = vmatpush3.msra.mxu1 %v3815_v19 }
0x1ed6   :  { %2912 = vmatprep.subr.mxu1 %v3130_v8 }
0x1ed7   :  { %2913 = vmatpush3.msra.mxu1 %v3825_v21 }
0x1ed8   :  { %2914 = vmatprep.subr.mxu1 %v3130_v8 }
0x1ed9   :  { %2915 = vmatpush3.msra.mxu1 %v3836_v23 }
0x1eda   :  { %2930 = vmatprep.subr.mxu1 %v3130_v8 }
0x1f92   :  { %v1884_v30 = vpop.f32.mrf.mxu1 }
0x1f93   :  { %v1889_v31 = vrot.slane %v1884_v30, 5 }
0x1f94   :  { %v2896_v32 = vpop.f32.mrf.mxu1 }
0x1f95   :  { %v1891_v33 = vadd.f32 %v1889_v31, %v3873_v16 }
0x1f97   :  { %3046 = vtanh.f32 %v1891_v33  ;;  %v2497_v35 = vmul.f32 -1.442695, %v1891_v33 }
0x1f99   :  { %3048 = vpow2.f32 %v2497_v35 }
0x1fa4   :  { %v3047_v34 = vpop.eup %3046 }
0x1fa5   :  { %1904 = vrot.lane.b32.xlu0 %v3047_v34, %s3132_s20 }
0x1fa6   :  { %v3049_v36 = vpop.eup %3048 }
0x1fa7   :  { %v1895_v37 = vadd.f32 1.0, %v3049_v36 }
0x1fa9   :  { %3050 = vrcp.f32 %v1895_v37 }
0x1fb6   :  { %v3051_v39 = vpop.eup %3050 }
0x1fb7   :  { %v1902_v43 = vmul.f32 %v3051_v39, %v1900_v42 }
0x2017   :  { %v1905_v40 = vpop.permute.xlu0 %1904 }
0x2018   :  { %v1907_v41 = vmul.f32 %v3051_v39, %v1905_v40 }
0x201a   :  { %1909 = vrot.lane.b32.xlu1 %v1907_v41, %s3132_s20 }
0x208c   :  { %v1910_v44 = vpop.permute.xlu1 %1909 }
0x208d   :  { %v1912_v45 = vadd.f32 %v1910_v44, %v1902_v43 }
0x208f   :  { %3052 = vtanh.f32 %v1912_v45  ;;  %v2007_v63 = vrot.slane %v1912_v45, 7 }
0x209c   :  { %v3053_v46 = vpop.eup %3052 }
0x209d   :  { %1915 = vrot.lane.b32.xlu0 %v3053_v46, %s3132_s20 }
0x210f   :  { %v1916_v47 = vpop.permute.xlu0 %1915 }
0x2110   :  { %v1918_v48 = vmul.f32 %v3051_v39, %v1916_v47 }
0x2112   :  { %v1920_v49 = vrot.slane %v1918_v48, 3  ;;  %v2349_v50 = vsel %vm1404_vm4, %v2348_v28, %v1918_v48 }
0x2114   :  { %1921 = vrot.lane.b32.xlu1 %v1920_v49, %s3133_s5 }
0x2186   :  { %v1922_v51 = vpop.permute.xlu1 %1921 }
0x2187   :  { %2906 = vmatmul.mubr.msk.f32.vlgmr.msra.gmra.mxu0 %vm476_vm1, %v1922_v51 }
0x2188   :  { %2920 = vmatpush3.msra.mxu0 %v3806_v17  ;;  %2927 = vmatprep.mubr.msk.f32.mxu0 %vm3131_vm0, %v3130_v8 }
0x2189   :  { %2921 = vmatprep.subr.mxu0 %v3130_v8 }
0x218a   :  { %2922 = vmatpush3.msra.mxu0 %v3815_v19 }
0x218b   :  { %2923 = vmatprep.subr.mxu0 %v3130_v8 }
0x218c   :  { %2924 = vmatpush3.msra.mxu0 %v3825_v21 }
0x218d   :  { %2925 = vmatprep.subr.mxu0 %v3130_v8 }
0x218e   :  { %2926 = vmatpush3.msra.mxu0 %v3836_v23 }
0x218f   :  { %2941 = vmatprep.subr.mxu0 %v3130_v8 }
0x2247   :  { %v1991_v52 = vpop.f32.mrf.mxu0 }
0x2248   :  { %v1996_v53 = vrot.slane %v1991_v52, 4 }
0x2249   :  { %v2907_v54 = vpop.f32.mrf.mxu0 }
0x224a   :  { %v1998_v55 = vadd.f32 %v1996_v53, %v3873_v16 }
0x224c   :  { %3054 = vtanh.f32 %v1998_v55  ;;  %v2499_v57 = vmul.f32 -1.442695, %v1998_v55 }
0x224e   :  { %3056 = vpow2.f32 %v2499_v57 }
0x2259   :  { %v3055_v56 = vpop.eup %3054 }
0x225a   :  { %2011 = vrot.lane.b32.xlu0 %v3055_v56, %s3132_s20 }
0x225b   :  { %v3057_v58 = vpop.eup %3056 }
0x225c   :  { %v2002_v59 = vadd.f32 1.0, %v3057_v58 }
0x225e   :  { %3058 = vrcp.f32 %v2002_v59 }
0x226b   :  { %v3059_v60 = vpop.eup %3058 }
0x226c   :  { %v2009_v0 = vmul.f32 %v3059_v60, %v2007_v63 }
0x22cc   :  { %v2012_v61 = vpop.permute.xlu0 %2011 }
0x22cd   :  { %v2014_v62 = vmul.f32 %v3059_v60, %v2012_v61 }
0x22cf   :  { %2016 = vrot.lane.b32.xlu1 %v2014_v62, %s3132_s20 }
0x2341   :  { %v2017_v1 = vpop.permute.xlu1 %2016 }
0x2342   :  { %v2019_v2 = vadd.f32 %v2017_v1, %v2009_v0 }
0x2344   :  { %3060 = vtanh.f32 %v2019_v2 }
0x2351   :  { %v3061_v3 = vpop.eup %3060 }
0x2352   :  { %2022 = vrot.lane.b32.xlu0 %v3061_v3, %s3132_s20 }
0x23c4   :  { %v2023_v4 = vpop.permute.xlu0 %2022 }
0x23c5   :  { %v2025_v5 = vmul.f32 %v3059_v60, %v2023_v4  ;;  %v2356_v4 = vld [vmem:[%s4021_s9 + $0x10] sm:$0xff] }
0x23c7   :  { %v2027_v6 = vrot.slane %v2025_v5, 4  ;;  %v2350_v7 = vsel %vm1406_vm5, %v2349_v50, %v2025_v5  ;;  %v2355_v5 = vld [vmem:[%s4021_s9 + $0x8] sm:$0xff] }
0x23c9   :  { %2028 = vrot.lane.b32.xlu1 %v2027_v6, %s3133_s5  ;;  %v2354_v6 = vld [vmem:[%s4021_s9] sm:$0xff] }
0x243b   :  { %v2029_v9 = vpop.permute.xlu1 %2028 }
0x243c   :  { %2917 = vmatmul.mubr.msk.f32.vlgmr.msra.gmra.mxu1 %vm476_vm1, %v2029_v9 }
0x243d   :  { %2931 = vmatpush3.msra.mxu1 %v3806_v17  ;;  %2938 = vmatprep.mubr.msk.f32.mxu1 %vm3131_vm0, %v3130_v8 }
0x243e   :  { %2932 = vmatprep.subr.mxu1 %v3130_v8 }
0x243f   :  { %2933 = vmatpush3.msra.mxu1 %v3815_v19 }
0x2440   :  { %2934 = vmatprep.subr.mxu1 %v3130_v8 }
0x2441   :  { %2935 = vmatpush3.msra.mxu1 %v3825_v21 }
0x2442   :  { %2936 = vmatprep.subr.mxu1 %v3130_v8 }
0x2443   :  { %2937 = vmatpush3.msra.mxu1 %v3836_v23  ;;  %v2114_v23 = vrot.slane %v2019_v2, 7 }
0x24fc   :  { %v2098_v11 = vpop.f32.mrf.mxu1 }
0x24fd   :  { %v2103_v13 = vrot.slane %v2098_v11, 3 }
0x24fe   :  { %v2918_v15 = vpop.f32.mrf.mxu1 }
0x24ff   :  { %v2105_v17 = vadd.f32 %v2103_v13, %v3873_v16 }
0x2501   :  { %3062 = vtanh.f32 %v2105_v17  ;;  %v2501_v18 = vmul.f32 -1.442695, %v2105_v17 }
0x2503   :  { %3064 = vpow2.f32 %v2501_v18 }
0x250e   :  { %v3063_v38 = vpop.eup %3062 }
0x250f   :  { %2118 = vrot.lane.b32.xlu0 %v3063_v38, %s3132_s20 }
0x2510   :  { %v3065_v19 = vpop.eup %3064 }
0x2511   :  { %v2109_v20 = vadd.f32 1.0, %v3065_v19 }
0x2513   :  { %3066 = vrcp.f32 %v2109_v20 }
0x2520   :  { %v3067_v22 = vpop.eup %3066 }
0x2521   :  { %v2116_v24 = vmul.f32 %v3067_v22, %v2114_v23 }
0x2581   :  { %v2119_v21 = vpop.permute.xlu0 %2118 }
0x2582   :  { %v2121_v10 = vmul.f32 %v3067_v22, %v2119_v21 }
0x2584   :  { %2123 = vrot.lane.b32.xlu1 %v2121_v10, %s3132_s20 }
0x25f6   :  { %v2124_v25 = vpop.permute.xlu1 %2123 }
0x25f7   :  { %v2126_v12 = vadd.f32 %v2124_v25, %v2116_v24 }
0x25f9   :  { %3068 = vtanh.f32 %v2126_v12  ;;  %v2221_v43 = vrot.slane %v2126_v12, 7 }
0x2606   :  { %v3069_v26 = vpop.eup %3068 }
0x2607   :  { %2129 = vrot.lane.b32.xlu0 %v3069_v26, %s3132_s20 }
0x2679   :  { %v2130_v27 = vpop.permute.xlu0 %2129 }
0x267a   :  { %v2132_v14 = vmul.f32 %v3067_v22, %v2130_v27 }
0x267c   :  { %v2134_v28 = vrot.slane %v2132_v14, 5  ;;  %v2351_v29 = vsel %vm1408_vm6, %v2350_v7, %v2132_v14 }
0x267e   :  { %2135 = vrot.lane.b32.xlu1 %v2134_v28, %s3133_s5 }
0x26f0   :  { %v2136_v30 = vpop.permute.xlu1 %2135 }
0x26f1   :  { %2928 = vmatmul.mubr.msk.f32.vlgmr.msra.gmra.mxu0 %vm476_vm1, %v2136_v30 }
0x26f2   :  { %2949 = vmatprep.mubr.msk.f32.mxu0 %vm3131_vm0, %v3130_v8 }
0x27b1   :  { %v2205_v31 = vpop.f32.mrf.mxu0 }
0x27b2   :  { %v2210_v32 = vrot.slane %v2205_v31, 2 }
0x27b3   :  { %v2929_v33 = vpop.f32.mrf.mxu0 }
0x27b4   :  { %v2212_v34 = vadd.f32 %v2210_v32, %v3873_v16 }
0x27b6   :  { %3070 = vtanh.f32 %v2212_v34  ;;  %v2503_v36 = vmul.f32 -1.442695, %v2212_v34 }
0x27b8   :  { %3072 = vpow2.f32 %v2503_v36 }
0x27c3   :  { %v3071_v35 = vpop.eup %3070 }
0x27c4   :  { %2225 = vrot.lane.b32.xlu0 %v3071_v35, %s3132_s20 }
0x27c5   :  { %v3073_v37 = vpop.eup %3072 }
0x27c6   :  { %v2216_v39 = vadd.f32 1.0, %v3073_v37 }
0x27c8   :  { %3074 = vrcp.f32 %v2216_v39 }
0x27d5   :  { %v3075_v40 = vpop.eup %3074 }
0x27d6   :  { %v2223_v44 = vmul.f32 %v3075_v40, %v2221_v43 }
0x2836   :  { %v2226_v41 = vpop.permute.xlu0 %2225 }
0x2837   :  { %v2228_v42 = vmul.f32 %v3075_v40, %v2226_v41 }
0x2839   :  { %2230 = vrot.lane.b32.xlu1 %v2228_v42, %s3132_s20 }
0x28ab   :  { %v2231_v45 = vpop.permute.xlu1 %2230 }
0x28ac   :  { %v2233_v46 = vadd.f32 %v2231_v45, %v2223_v44 }
0x28ae   :  { %3076 = vtanh.f32 %v2233_v46  ;;  %v2328_v0 = vrot.slane %v2233_v46, 7 }
0x28bb   :  { %v3077_v47 = vpop.eup %3076 }
0x28bc   :  { %2236 = vrot.lane.b32.xlu0 %v3077_v47, %s3132_s20 }
0x292e   :  { %v2237_v48 = vpop.permute.xlu0 %2236 }
0x292f   :  { %v2239_v49 = vmul.f32 %v3075_v40, %v2237_v48 }
0x2931   :  { %v2241_v50 = vrot.slane %v2239_v49, 6  ;;  %v2352_v51 = vsel %vm1410_vm7, %v2351_v29, %v2239_v49 }
0x2933   :  { %2242 = vrot.lane.b32.xlu1 %v2241_v50, %s3133_s5 }
0x29a5   :  { %v2243_v52 = vpop.permute.xlu1 %2242 }
0x29a6   :  { %2939 = vmatmul.mubr.msk.f32.vlgmr.msra.gmra.mxu1 %vm476_vm1, %v2243_v52 }
0x2a66   :  { %v2312_v53 = vpop.f32.mrf.mxu1 }
0x2a67   :  { %v2317_v54 = vrot.slane %v2312_v53, 1 }
0x2a68   :  { %v2940_v55 = vpop.f32.mrf.mxu1 }
0x2a69   :  { %v2319_v56 = vadd.f32 %v2317_v54, %v3873_v16  ;;  %v2357_v16 = vld [vmem:[%s4021_s9 + $0x18] sm:$0xff]  ;;  %s3086_s9 = scalar_lea.vmem %s2450_s1, 128 }
0x2a6a   :  { %2942 = vmatpush3.msra.mxu0 %v2357_v16  ;;  %p3087_p0 = scmp.ne.s32.totalorder %s2450_s1, %s3086_s9  ;;  %p3092_p2 = scmp.lt.s32.totalorder %s3086_s9, %s3086_s9 }
0x2a6b   :  { %3078 = vtanh.f32 %v2319_v56  ;;  %v2505_v58 = vmul.f32 -1.442695, %v2319_v56  ;;  %2943 = vmatprep.subr.mxu0 %v3130_v8 }
0x2a6c   :  { %2944 = vmatpush3.msra.mxu0 %v2356_v4  ;;  %p3093_p3 = por %p3092_p2, %p3091_p1 }
0x2a6d   :  { %3080 = vpow2.f32 %v2505_v58  ;;  %2945 = vmatprep.subr.mxu0 %v3130_v8 }
0x2a6e   :  { %2946 = vmatpush3.msra.mxu0 %v2355_v5  ;;  %p3094_p4 = pnand %p3093_p3, %p3087_p0 }
0x2a6f   :  { %2947 = vmatprep.subr.mxu0 %v3130_v8 }
0x2a70   :  { %2948 = vmatpush3.msra.mxu0 %v2354_v6 }
0x2a78   :  { %v3079_v57 = vpop.eup %3078 }
0x2a79   :  { %2332 = vrot.lane.b32.xlu0 %v3079_v57, %s3132_s20 }
0x2a7a   :  { %v3081_v59 = vpop.eup %3080 }
0x2a7b   :  { %v2323_v60 = vadd.f32 1.0, %v3081_v59 }
0x2a7d   :  { %3082 = vrcp.f32 %v2323_v60 }
0x2a8a   :  { %v3083_v61 = vpop.eup %3082 }
0x2a8b   :  { %v2330_v1 = vmul.f32 %v3083_v61, %v2328_v0 }
0x2aeb   :  { %v2333_v62 = vpop.permute.xlu0 %2332 }
0x2aec   :  { %v2335_v63 = vmul.f32 %v3083_v61, %v2333_v62 }
0x2aee   :  { %2337 = vrot.lane.b32.xlu1 %v2335_v63, %s3132_s20 }
0x2b60   :  { %v2338_v2 = vpop.permute.xlu1 %2337 }
0x2b61   :  { %v2340_v3 = vadd.f32 %v2338_v2, %v2330_v1 }
0x2b63   :  { %3084 = vtanh.f32 %v2340_v3 }
0x2b70   :  { %v3085_v7 = vpop.eup %3084 }
0x2b71   :  { %2343 = vrot.lane.b32.xlu0 %v3085_v7, %s3132_s20 }
0x2be3   :  { %v2344_v9 = vpop.permute.xlu0 %2343 }
0x2be4   :  { %v2346_v11 = vmul.f32 %v3083_v61, %v2344_v9 }
0x2be6   :  { %v2353_v13 = vsel %vm1412_vm8, %v2352_v51, %v2346_v11 }
0x2be7   :  { %2366 = vrot.lane.b32.xlu1 %v2353_v13, %s3133_s5 }
0x2c59   :  { %v2367_v15 = vpop.permute.xlu1 %2366 }
0x2c5a   :  { %2950 = vmatmul.mubr.msk.f32.vlgmr.msra.gmra.mxu0 %vm476_vm1, %v2367_v15 }
0x2c5b   :  { %3097 = shalt.err (!%p3094_p4)
}
0x2c5c   :  { %2452 = dma.vmem_to_hbm [thread:$0]  %s2450_s1, 128, %s4023_s11, [#allocation3]   ;;  %v2506_v17 = vld [vmem:[%s4022_s10] ss:$0 sm:$0xff] }
0x2c5d   :  { %s3135_s25 = smov [#allocation4]  }
0x2c5e   :  { %s2459_s0 = sshll.u32 %s3135_s25, 4  ;;  %s2460_s0 = int_to_ptr.vmem [resolvable:$true] %s2459_s0 }
0x2c5f   :  { %s3106_s26 = scalar_lea.vmem %s2460_s0, 128  ;;  %p3111_p6 = scmp.lt.s32.totalorder %s2460_s0, %s2460_s0 }
0x2c60   :  { %p3107_p5 = scmp.ne.s32.totalorder %s2460_s0, %s3106_s26  ;;  %p3112_p7 = scmp.lt.s32.totalorder %s3106_s26, %s3106_s26 }
0x2c62   :  { %p3113_p8 = por %p3112_p7, %p3111_p6 }
0x2c64   :  { %p3114_p9 = pnand %p3113_p8, %p3107_p5 }
0x2d1a   :  { %v2436_v38 = vpop.f32.mrf.mxu0 }
0x2d1b   :  { %v2437_v8 = vadd.f32 %v2506_v17, %v2436_v38 }
0x2d1c   :  { %v2951_v18 = vpop.f32.mrf.mxu0 }
0x2d1d   :  { %2441 = vst.msk [vmem:[#allocation4] sm:$0xff] %vm2440_vm9, %v2437_v8 }
0x2d1e   :  { %3117 = shalt.err (!%p3114_p9)
}
0x2d1f   :  { %2462 = dma.vmem_to_hbm [thread:$0]  %s2460_s0, 128, %s4024_s12, [#allocation5]  }
0x2d20   :  { %3126 = dma.done.wait [#allocation3], 128  }
0x2d21   :  { %3127 = vsyncadd [#allocation3], 4294967168 }
0x2d22   :  { %3128 = dma.done.wait [#allocation5], 128  }
0x2d23   :  { %3129 = vsyncadd [#allocation5], 4294967168 }
0x2d24   :  { %2469 = vsyncpa [#allocation3], 1 }
0x2d25   :  { %2470 = vsyncpa [#allocation5], 1 }

</bundles_post_ra>
